<compile_context>
chip_gen: v7x
topology: tpu7x:2x2x1
jax: 0.10.0
libtpu: 0.0.40
codegen_flags: <defaults>
</compile_context>

<pallas_src>
import math
import numpy as np
import jax
import jax.numpy as jnp
from jax import lax
from jax.experimental import pallas as pl
from jax.experimental.pallas import tpu as pltpu

# ---------------- cfg-like configuration ----------------
SAMPLE_RATE = 32000
N_FFT = 256
HOP = 128
N_MELS = 64

_FIVE_OVER_LN10 = 5.0 / math.log(10.0)
_AMIN_POW = 1e-20          # amin=1e-10 applied to magnitude == 1e-20 on power


# ---------------- deterministic parameter construction (numpy, trace-time) ----
def _hz_to_mel(f):
    f = np.asarray(f, dtype=np.float64)
    f_sp = 200.0 / 3
    mels = f / f_sp
    min_log_hz = 1000.0
    min_log_mel = min_log_hz / f_sp
    logstep = np.log(6.4) / 27.0
    return np.where(
        f >= min_log_hz,
        min_log_mel + np.log(np.maximum(f, 1e-12) / min_log_hz) / logstep,
        mels,
    )


def _mel_to_hz(m):
    m = np.asarray(m, dtype=np.float64)
    f_sp = 200.0 / 3
    freqs = f_sp * m
    min_log_hz = 1000.0
    min_log_mel = min_log_hz / f_sp
    logstep = np.log(6.4) / 27.0
    return np.where(
        m >= min_log_mel,
        min_log_hz * np.exp(logstep * (m - min_log_mel)),
        freqs,
    )


def mel_filterbank(sr, n_fft, n_mels, fmin, fmax):
    """librosa.filters.mel (Slaney scale, slaney norm) -> (n_mels, n_fft//2+1)."""
    n_freq = n_fft // 2 + 1
    fftfreqs = np.linspace(0.0, sr / 2.0, n_freq)
    mel_f = _mel_to_hz(np.linspace(_hz_to_mel(fmin), _hz_to_mel(fmax), n_mels + 2))
    fdiff = np.diff(mel_f)
    ramps = mel_f[:, None] - fftfreqs[None, :]
    weights = np.zeros((n_mels, n_freq), dtype=np.float64)
    for i in range(n_mels):
        lower = -ramps[i] / fdiff[i]
        upper = ramps[i + 2] / fdiff[i + 1]
        weights[i] = np.maximum(0.0, np.minimum(lower, upper))
    enorm = 2.0 / (mel_f[2: n_mels + 2] - mel_f[:n_mels])
    weights *= enorm[:, None]
    return weights


def _round_up(x, m):
    return ((x + m - 1) // m) * m


# ---------------- Pallas kernel (hot path) ----------------
def _extractor_kernel(blk0_ref, blk1_ref, bnd0_ref, bnd1_ref,
                      wstft_ref, melap_ref, melbp_ref, ggcc_ref,
                      out_ref, mx_ref):
    cdt = wstft_ref.dtype          # compute dtype of the MXU operands
    tile = blk0_ref.shape[1]       # frame rows per grid step
    nm = 64                        # n_mels (kernel specialised to 64)
    nf = 128                       # retained frequency lanes (bins 0..127)

    lane = lax.broadcasted_iota(jnp.int32, (1, nf), 1)
    row = lax.broadcasted_iota(jnp.int32, (tile, nf), 0)
    is_last_row = row == (tile - 1)

    def frames(blk_ref, bnd_ref):
        # hop == n_fft//2: frame t = [block_t | block_{t+1}].  block_{t+1} of
        # the last row of the tile is supplied by the (1,128) boundary input.
        # The sublane shift is done in f32 (robust roll lowering) and cast
        # back to the compute dtype before the lane concat.
        cur = blk_ref[0]                                            # (tile,128)
        nxt = pltpu.roll(cur.astype(jnp.float32), shift=tile - 1, axis=0)
        b0 = bnd_ref[0, 0, 0:1, :].astype(jnp.float32)              # (1,128)
        nxt = jnp.where(is_last_row, b0, nxt).astype(cdt)
        return jnp.concatenate([cur, nxt], axis=1)                  # (tile,256)

    fr0 = frames(blk0_ref, bnd0_ref)
    fr1 = frames(blk1_ref, bnd1_ref)

    # ---- STFT: one windowed-DFT matmul per channel (MXU, K=256) -------------
    # st = [Re X_0..127 | Re X_128 (Nyquist), Im X_1..127]
    st0 = jnp.dot(fr0, wstft_ref[...], preferred_element_type=jnp.float32)
    st1 = jnp.dot(fr1, wstft_ref[...], preferred_element_type=jnp.float32)
    re0, iq0 = st0[:, :nf], st0[:, nf:]
    re1, iq1 = st1[:, :nf], st1[:, nf:]

    # ---- mel projection folded into the frame basis (channel-pair layout) ---
    # melP = [ReM0 | ReM1 | ImM0 | ImM1]  (64 lanes each, all 128-aligned)
    melP = (jnp.dot(fr0, melap_ref[...], preferred_element_type=jnp.float32)
            + jnp.dot(fr1, melbp_ref[...], preferred_element_type=jnp.float32))
    reP, imP = melP[:, :nf], melP[:, nf:]

    # ---- power-domain log-mel / ILD / IPD, one shared rsqrt -----------------
    p = reP * reP + imP * imP                                        # [p0 | p1]
    # librosa.power_to_db applied to |melspec| (amin on magnitude => amin^2 on
    # power); the global top_db clamp is hoisted to the wrapper.
    db_pair = _FIVE_OVER_LN10 * jnp.log(jnp.maximum(p, _AMIN_POW))   # [db0|db1]

    p_sw = pltpu.roll(p, shift=nm, axis=1)                           # [p1 | p0]
    re_sw = pltpu.roll(reP, shift=nm, axis=1)
    im_sw = pltpu.roll(imP, shift=nm, axis=1)

    zr = reP * re_sw + imP * im_sw          # Re(M0 * conj(M1)), lanes 0..63 valid
    zi = imP * re_sw - reP * im_sw          # Im(M0 * conj(M1)), lanes 0..63 valid
    denom = p * p_sw                        # (|M0| |M1|)^2
    inv = lax.rsqrt(denom + 1e-30)
    ild = p * inv                           # |M0| / |M1|  (lanes 0..63 valid)
    # Degenerate mel bins (identically-zero filter weight => M0 == M1 == 0):
    # angle(0) == 0 in the reference, so cos(IPD)=1, sin(IPD)=0 there.
    nonzero = denom > 0.0
    cosipd = jnp.where(nonzero, zr * inv, 1.0)
    sinipd = jnp.where(nonzero, zi * inv, 0.0)

    # ---- GCC-PHAT on the raw (pre-mel) cross-spectrum ------------------------
    rr = re0 * re1 + iq0 * iq1
    ri = iq0 * re1 - re0 * iq1
    inv_r = lax.rsqrt(rr * rr + ri * ri + 1e-30)
    cr = rr * inv_r
    si = ri * inv_r
    # DC (bin 0) and Nyquist (bin 128) of the cross-spectrum are real; their
    # phase-normalised value is +-1.  Both live in lane 0 of the re*/iq* slabs.
    is_lane0 = lane == 0
    cr = jnp.where(is_lane0, jnp.where(re0 * re1 >= 0.0, 1.0, -1.0), cr)
    si = jnp.where(is_lane0, jnp.where(iq0 * iq1 >= 0.0, 1.0, -1.0), si)
    csi = jnp.concatenate([cr, si], axis=1).astype(cdt)              # (tile,256)
    # restricted inverse rFFT; result lives in lanes 64..127 of gcc_hi
    gcc_hi = jnp.dot(csi, ggcc_ref[...], preferred_element_type=jnp.float32)

    # ---- lane-dense output assembly: three full-128-lane stores --------------
    lo = lane < nm
    out_ref[0, :, 0:128] = db_pair                                             # db0|db1
    out_ref[0, :, 128:256] = jnp.where(lo, ild, pltpu.roll(sinipd, shift=nm, axis=1))
    out_ref[0, :, 256:384] = jnp.where(lo, cosipd, gcc_hi)                     # cos|gcc

    # per-tile max of the dB lanes (for the hoisted librosa top_db clamp);
    # padded rows are all-zero blocks -> db == -100 dB, never the maximum.
    mx_ref[0, 0, :, :] = jnp.broadcast_to(
        jnp.max(db_pair, axis=0, keepdims=True), (8, nf))


# ---------------- wrapper ----------------
class LogmelIntensityExtractorPallas:
    """TPU Pallas version of LogmelIntensity_Extractor.forward.

    Output: (batch, 6, time, n_mels) float32 with channels
      [logmel(ch0), logmel(ch1), ILD, sin(IPD), cos(IPD), GCC-PHAT].
    """

    def __init__(self, sample_rate=SAMPLE_RATE, n_fft=N_FFT, hop=HOP, n_mels=N_MELS,
                 fmin=50.0, fmax=14000.0, compute_dtype=jnp.bfloat16, tile_rows=1024):
        if n_fft != 256 or n_mels != 64 or hop != n_fft // 2:
            raise NotImplementedError(
                "kernel is specialised for n_fft=256, hop=128, n_mels=64")
        self.n_fft = n_fft
        self.hop = hop
        self.n_mels = n_mels
        self.compute_dtype = compute_dtype
        self.tile_rows = max(16, _round_up(tile_rows, 16))

        n = np.arange(n_fft, dtype=np.float64)
        window = 0.5 - 0.5 * np.cos(2.0 * np.pi * n / n_fft)      # periodic hann

        # STFT basis: frames @ W_stft -> [Re X_0..127 | ReX_128, Im X_1..127]
        k = np.arange(128, dtype=np.float64)
        ang = 2.0 * np.pi * np.outer(n, k) / n_fft
        wc = window[:, None] * np.cos(ang)                        # (256, 128)
        ws = -window[:, None] * np.sin(ang)                       # (256, 128), col 0 == 0
        ws[:, 0] = window * np.cos(np.pi * n)                     # Nyquist real part
        w_stft = np.concatenate([wc, ws], axis=1)                 # (256, 256)

        # Mel bases (channel-pair layout).  The Slaney filterbank with fmin=50,
        # fmax=14000, sr=32000 has exactly-zero weight at bin 0 and at the
        # Nyquist bin, so dropping bin 128 (its real part is stuffed into lane
        # 0 of the imag slab) is exact for the mel path.
        melW = mel_filterbank(sample_rate, n_fft, n_mels, fmin, fmax)  # (64, 129)
        assert np.all(melW[:, 0] == 0.0) and np.all(melW[:, 128] == 0.0)
        mel128 = melW[:, :128].T                                   # (128, 64)
        mela = np.zeros((256, 256), dtype=np.float64)
        melb = np.zeros((256, 256), dtype=np.float64)
        mela[0:128, 0:64] = mel128       # ReM0
        mela[128:256, 128:192] = mel128  # ImM0
        melb[0:128, 64:128] = mel128     # ReM1
        melb[128:256, 192:256] = mel128  # ImM1
        # fold mel projection into the frame basis (float64, one rounding)
        melap = w_stft @ mela
        melbp = w_stft @ melb

        # GCC inverse-rFFT basis restricted to the rolled output taps
        # gcc = cat(irfft[..., -n_mels//2:], irfft[..., :n_mels//2]),
        # shifted into lanes 64..127 so the final store is a full 128-lane write.
        # Row 0 (DC) and row 128 (Nyquist) consume the +-1 signs placed in lane 0
        # of cr / si by the kernel.
        m_idx = np.concatenate([np.arange(n_fft - n_mels // 2, n_fft),
                                np.arange(0, n_mels // 2)]).astype(np.float64)
        kk = np.arange(128, dtype=np.float64)
        phase = 2.0 * np.pi * np.outer(kk, m_idx) / n_fft
        gc = (2.0 / n_fft) * np.cos(phase)
        gs = -(2.0 / n_fft) * np.sin(phase)
        gc[0, :] = 1.0 / n_fft                                     # DC tap
        gs[0, :] = np.cos(np.pi * m_idx) / n_fft                   # Nyquist tap
        ggcc = np.zeros((256, 128), dtype=np.float64)
        ggcc[:, 64:] = np.concatenate([gc, gs], axis=0)

        cd = compute_dtype
        self.w_stft = jnp.asarray(w_stft.astype(np.float32)).astype(cd)
        self.melap = jnp.asarray(melap.astype(np.float32)).astype(cd)
        self.melbp = jnp.asarray(melbp.astype(np.float32)).astype(cd)
        self.ggcc = jnp.asarray(ggcc.astype(np.float32)).astype(cd)

    def _blocks(self, sig, t_pad):
        """Non-overlapping hop-sized (128-sample) blocks of the reflect-padded
        signal (torch.stft center=True, pad_mode='reflect' framing):
        frame t == concat(blocks[t], blocks[t+1]).  Shape (B, t_pad+1, 128)."""
        B = sig.shape[0]
        pad = self.n_fft // 2
        xp = jnp.pad(sig, ((0, 0), (pad, pad)), mode="reflect")
        need = (t_pad + 1) * self.hop
        if xp.shape[1] < need:
            xp = jnp.pad(xp, ((0, 0), (0, need - xp.shape[1])))
        else:
            xp = xp[:, :need]
        return xp.astype(self.compute_dtype).reshape(B, t_pad + 1, self.hop)

    def __call__(self, x):
        if x.ndim != 3:
            raise ValueError("x shape must be (batch_size, num_channels, data_length)")
        B, _, L = x.shape
        T = 1 + L // self.hop
        M = self.n_mels

        tile_t = min(self.tile_rows, _round_up(T, 16))
        n_t = pl.cdiv(T, tile_t)
        t_pad = n_t * tile_t

        blk0 = self._blocks(x[:, 0, :], t_pad)       # (B, t_pad+1, 128)
        blk1 = self._blocks(x[:, 1, :], t_pad)
        # per-tile boundary rows blocks[(i+1)*tile_t], replicated to 8 sublanes
        bnd0 = jnp.broadcast_to(blk0[:, tile_t::tile_t, None, :],
                                (B, n_t, 8, self.hop))
        bnd1 = jnp.broadcast_to(blk1[:, tile_t::tile_t, None, :],
                                (B, n_t, 8, self.hop))

        def resident(shape):
            return pl.BlockSpec(shape, lambda b, i: (0, 0))

        out, mx = pl.pallas_call(
            _extractor_kernel,
            out_shape=(jax.ShapeDtypeStruct((B, T, 6 * M), jnp.float32),
                       jax.ShapeDtypeStruct((B, n_t, 8, 128), jnp.float32)),
            grid=(B, n_t),
            in_specs=[
                pl.BlockSpec((1, tile_t, self.hop), lambda b, i: (b, i, 0)),
                pl.BlockSpec((1, tile_t, self.hop), lambda b, i: (b, i, 0)),
                pl.BlockSpec((1, 1, 8, self.hop), lambda b, i: (b, i, 0, 0)),
                pl.BlockSpec((1, 1, 8, self.hop), lambda b, i: (b, i, 0, 0)),
                resident((256, 256)),
                resident((256, 256)),
                resident((256, 256)),
                resident((256, 128)),
            ],
            out_specs=(
                pl.BlockSpec((1, tile_t, 6 * M), lambda b, i: (b, i, 0)),
                pl.BlockSpec((1, 1, 8, 128), lambda b, i: (b, i, 0, 0)),
            ),
            compiler_params=pltpu.CompilerParams(
                dimension_semantics=("parallel", "parallel"),
                vmem_limit_bytes=48 * 1024 * 1024,
            ),
        )(blk0, blk1, bnd0, bnd1, self.w_stft, self.melap, self.melbp, self.ggcc)

        # librosa.power_to_db(top_db=80) global (per-channel, whole-tensor)
        # clamp: the max comes from the tiny per-tile-max output, then one
        # fused masked-maximum + transpose pass over the kernel output.
        lane_max = jnp.max(mx, axis=(0, 1, 2))                      # (128,)
        floors = jnp.concatenate(
            [jnp.stack([jnp.max(lane_max[:M]), jnp.max(lane_max[M:])]) - 80.0,
             jnp.full((4,), -jnp.inf, dtype=jnp.float32)])           # (6,)
        y = out.reshape(B, T, 6, M)
        y = jnp.maximum(y, floors[None, None, :, None])
        return jnp.transpose(y, (0, 2, 1, 3)).astype(jnp.float32)


# ---------------- independent float32 reference (verification only) ----------
def reference_forward_fft(x, sample_rate=SAMPLE_RATE, n_fft=N_FFT, hop=HOP,
                          n_mels=N_MELS, fmin=50.0, fmax=14000.0):
    pad = n_fft // 2
    n = np.arange(n_fft, dtype=np.float64)
    window = jnp.asarray((0.5 - 0.5 * np.cos(2.0 * np.pi * n / n_fft)).astype(np.float32))
    melW = jnp.asarray(
        mel_filterbank(sample_rate, n_fft, n_mels, fmin, fmax).T.astype(np.float32))

    def stft(sig):
        sp = jnp.pad(sig, ((0, 0), (pad, pad)), mode="reflect")
        n_frames = 1 + sig.shape[1] // hop
        idx = jnp.arange(n_frames)[:, None] * hop + jnp.arange(n_fft)[None, :]
        return jnp.fft.rfft(sp[:, idx] * window[None, None, :], axis=-1)

    Px = stft(x[:, 0, :].astype(jnp.float32))
    Pr = stft(x[:, 1, :].astype(jnp.float32))
    Pxm = Px @ melW.astype(jnp.complex64)
    Prm = Pr @ melW.astype(jnp.complex64)
    mag0, mag1 = jnp.abs(Pxm), jnp.abs(Prm)
    ild = mag0 / (mag1 + 1e-20)
    d = jnp.angle(Pxm) - jnp.angle(Prm)

    def p2db(S):
        db = 10.0 * jnp.log10(jnp.maximum(S, 1e-10))
        return jnp.maximum(db, jnp.max(db) - 80.0)

    R = Px * jnp.conj(Pr)
    gcc = jnp.fft.irfft(jnp.exp(1j * jnp.angle(R)), axis=-1)
    gcc = jnp.concatenate([gcc[..., -n_mels // 2:], gcc[..., : n_mels // 2]], axis=-1)
    out = jnp.stack([p2db(mag0), p2db(mag1), ild, jnp.sin(d), jnp.cos(d), gcc], axis=1)
    return out.astype(jnp.float32)


if __name__ == "__main__":
    key = jax.random.PRNGKey(0)
    B, C, L = 2, 4, 1920                      # -> T = 1 + L // HOP = 16 frames
    x = jax.random.normal(key, (B, C, L), dtype=jnp.float32)

    y_ref = np.asarray(jax.block_until_ready(reference_forward_fft(x)))

    # --- float32 mode: strict structural check vs. independent FFT reference ---
    ext32 = LogmelIntensityExtractorPallas(compute_dtype=jnp.float32)
    y32 = np.asarray(jax.block_until_ready(jax.jit(ext32.__call__)(x)))
    assert y32.shape == (B, 6, 1 + L // HOP, N_MELS) and y32.dtype == np.float32
    checks = [
        (0, 1e-2, 1e-2), (1, 1e-2, 1e-2),     # log-mel (both channels)
        (2, 2e-2, 3e-2),                      # ILD
        (3, 3e-2, 0.0), (4, 3e-2, 0.0),       # sin/cos IPD (notches ill-conditioned)
        (5, 1e-3, 0.0),                       # GCC-PHAT (tight: catches DC/Nyq bugs)
    ]
    for ch, atol, rtol in checks:
        if not np.allclose(y32[:, ch], y_ref[:, ch], atol=atol, rtol=rtol):
            err = float(np.max(np.abs(y32[:, ch] - y_ref[:, ch])))
            raise AssertionError(f"f32 kernel mismatch on channel {ch}: max abs err {err}")

    # --- bfloat16 mode (default performance config) ----------------------------
    ext16 = LogmelIntensityExtractorPallas()  # bf16 blocks & bases, f32 accumulation
    y16 = np.asarray(jax.block_until_ready(jax.jit(ext16.__call__)(x)))
    assert y16.shape == y32.shape and np.all(np.isfinite(y16))
    # log-mel and GCC are well conditioned under bf16 input quantisation; ILD/IPD
    # at deep spectral notches are not, so IPD is checked via sin^2+cos^2 == 1.
    assert np.allclose(y16[:, 0:2], y32[:, 0:2], atol=0.5, rtol=0.15), "bf16 log-mel drift"
    assert np.allclose(y16[:, 5], y32[:, 5], atol=5e-2), "bf16 GCC drift"
    assert np.allclose(y16[:, 3] ** 2 + y16[:, 4] ** 2, 1.0, atol=5e-2), "IPD not unit-norm"

    print("KERNEL_OK")
</pallas_src>

<mosaic_0001>
module attributes {stable_mosaic.version = 11 : i64} {
  func.func @_extractor_kernel(%arg0: i32, %arg1: i32, %arg2: memref<1x16x128xf32, #tpu.memory_space<vmem>>, %arg3: memref<1x16x128xf32, #tpu.memory_space<vmem>>, %arg4: memref<1x1x8x128xf32, #tpu.memory_space<vmem>>, %arg5: memref<1x1x8x128xf32, #tpu.memory_space<vmem>>, %arg6: memref<256x256xf32, #tpu.memory_space<vmem>>, %arg7: memref<256x256xf32, #tpu.memory_space<vmem>>, %arg8: memref<256x256xf32, #tpu.memory_space<vmem>>, %arg9: memref<256x128xf32, #tpu.memory_space<vmem>>, %arg10: memref<1x16x384xf32, #tpu.memory_space<vmem>>, %arg11: memref<1x1x8x128xf32, #tpu.memory_space<vmem>>) attributes {dimension_semantics = [#tpu.dimension_semantics<parallel>, #tpu.dimension_semantics<parallel>], iteration_bounds = array<i64: 2, 1>, scalar_prefetch = 0 : i64, scratch_operands = 0 : i64, tpu.core_type = #tpu.core_type<tc>, window_params = [{transform_indices = @transform_0, window_bounds = array<i64: 1, 16, 128>}, {transform_indices = @transform_1, window_bounds = array<i64: 1, 16, 128>}, {transform_indices = @transform_2, window_bounds = array<i64: 1, 1, 8, 128>}, {transform_indices = @transform_3, window_bounds = array<i64: 1, 1, 8, 128>}, {pipeline_mode = #tpu.pipeline_mode<synchronous>, transform_indices = @transform_4, window_bounds = array<i64: 256, 256>}, {pipeline_mode = #tpu.pipeline_mode<synchronous>, transform_indices = @transform_5, window_bounds = array<i64: 256, 256>}, {pipeline_mode = #tpu.pipeline_mode<synchronous>, transform_indices = @transform_6, window_bounds = array<i64: 256, 256>}, {pipeline_mode = #tpu.pipeline_mode<synchronous>, transform_indices = @transform_7, window_bounds = array<i64: 256, 128>}, {transform_indices = @transform_8, window_bounds = array<i64: 1, 16, 384>}, {transform_indices = @transform_9, window_bounds = array<i64: 1, 1, 8, 128>}]} {
    %0 = tpu.iota {dimensions = array<i32: 1>} : vector<1x128xi32>
    %1 = tpu.iota {dimensions = array<i32: 0>} : vector<16x128xi32>
    %c15_i32 = arith.constant 15 : i32
    %2 = vector.broadcast %c15_i32 : i32 to vector<16x128xi32>
    %3 = arith.cmpi eq, %1, %2 : vector<16x128xi32>
    %c0 = arith.constant 0 : index
    %c0_0 = arith.constant 0 : index
    %c0_1 = arith.constant 0 : index
    %4 = vector.load %arg2[%c0, %c0_0, %c0_1] : memref<1x16x128xf32, #tpu.memory_space<vmem>>, vector<1x16x128xf32>
    %5 = vector.shape_cast %4 : vector<1x16x128xf32> to vector<16x128xf32>
    %c15_i32_2 = arith.constant 15 : i32
    %6 = tpu.dynamic_rotate %5 by %c15_i32_2 dim 0 : vector<16x128xf32>, i32 -> vector<16x128xf32>
    %c0_3 = arith.constant 0 : index
    %c0_4 = arith.constant 0 : index
    %c0_5 = arith.constant 0 : index
    %c0_6 = arith.constant 0 : index
    %7 = vector.load %arg4[%c0_3, %c0_4, %c0_5, %c0_6] : memref<1x1x8x128xf32, #tpu.memory_space<vmem>>, vector<1x1x1x128xf32>
    %8 = vector.shape_cast %7 : vector<1x1x1x128xf32> to vector<1x128xf32>
    %9 = vector.shape_cast %8 : vector<1x128xf32> to vector<1x128xf32>
    %10 = vector.broadcast %9 : vector<1x128xf32> to vector<16x128xf32>
    %11 = arith.select %3, %10, %6 : vector<16x128xi1>, vector<16x128xf32>
    %12 = tpu.concatenate %5, %11 in 1 : vector<16x128xf32>, vector<16x128xf32> -> vector<16x256xf32>
    %c0_7 = arith.constant 0 : index
    %c0_8 = arith.constant 0 : index
    %c0_9 = arith.constant 0 : index
    %13 = vector.load %arg3[%c0_7, %c0_8, %c0_9] : memref<1x16x128xf32, #tpu.memory_space<vmem>>, vector<1x16x128xf32>
    %14 = vector.shape_cast %13 : vector<1x16x128xf32> to vector<16x128xf32>
    %c15_i32_10 = arith.constant 15 : i32
    %15 = tpu.dynamic_rotate %14 by %c15_i32_10 dim 0 : vector<16x128xf32>, i32 -> vector<16x128xf32>
    %c0_11 = arith.constant 0 : index
    %c0_12 = arith.constant 0 : index
    %c0_13 = arith.constant 0 : index
    %c0_14 = arith.constant 0 : index
    %16 = vector.load %arg5[%c0_11, %c0_12, %c0_13, %c0_14] : memref<1x1x8x128xf32, #tpu.memory_space<vmem>>, vector<1x1x1x128xf32>
    %17 = vector.shape_cast %16 : vector<1x1x1x128xf32> to vector<1x128xf32>
    %18 = vector.shape_cast %17 : vector<1x128xf32> to vector<1x128xf32>
    %19 = vector.broadcast %18 : vector<1x128xf32> to vector<16x128xf32>
    %20 = arith.select %3, %19, %15 : vector<16x128xi1>, vector<16x128xf32>
    %21 = tpu.concatenate %14, %20 in 1 : vector<16x128xf32>, vector<16x128xf32> -> vector<16x256xf32>
    %c0_15 = arith.constant 0 : index
    %c0_16 = arith.constant 0 : index
    %22 = vector.load %arg6[%c0_15, %c0_16] : memref<256x256xf32, #tpu.memory_space<vmem>>, vector<256x256xf32>
    %cst = arith.constant dense<0.000000e+00> : vector<16x256xf32>
    %23 = tpu.matmul %12, %22, %cst {dimension_numbers = #tpu.dot_dimension_numbers<[1], [0], [0], [1], [0, 0, 1, 1], [], []>} : vector<16x256xf32>, vector<256x256xf32>, vector<16x256xf32> -> vector<16x256xf32>
    %c0_17 = arith.constant 0 : index
    %c0_18 = arith.constant 0 : index
    %24 = vector.load %arg6[%c0_17, %c0_18] : memref<256x256xf32, #tpu.memory_space<vmem>>, vector<256x256xf32>
    %cst_19 = arith.constant dense<0.000000e+00> : vector<16x256xf32>
    %25 = tpu.matmul %21, %24, %cst_19 {dimension_numbers = #tpu.dot_dimension_numbers<[1], [0], [0], [1], [0, 0, 1, 1], [], []>} : vector<16x256xf32>, vector<256x256xf32>, vector<16x256xf32> -> vector<16x256xf32>
    %26 = vector.extract_strided_slice %23 {offsets = [0, 0], sizes = [16, 128], strides = [1, 1]} : vector<16x256xf32> to vector<16x128xf32>
    %27 = vector.extract_strided_slice %23 {offsets = [0, 128], sizes = [16, 128], strides = [1, 1]} : vector<16x256xf32> to vector<16x128xf32>
    %28 = vector.extract_strided_slice %25 {offsets = [0, 0], sizes = [16, 128], strides = [1, 1]} : vector<16x256xf32> to vector<16x128xf32>
    %29 = vector.extract_strided_slice %25 {offsets = [0, 128], sizes = [16, 128], strides = [1, 1]} : vector<16x256xf32> to vector<16x128xf32>
    %c0_20 = arith.constant 0 : index
    %c0_21 = arith.constant 0 : index
    %30 = vector.load %arg7[%c0_20, %c0_21] : memref<256x256xf32, #tpu.memory_space<vmem>>, vector<256x256xf32>
    %cst_22 = arith.constant dense<0.000000e+00> : vector<16x256xf32>
    %31 = tpu.matmul %12, %30, %cst_22 {dimension_numbers = #tpu.dot_dimension_numbers<[1], [0], [0], [1], [0, 0, 1, 1], [], []>} : vector<16x256xf32>, vector<256x256xf32>, vector<16x256xf32> -> vector<16x256xf32>
    %c0_23 = arith.constant 0 : index
    %c0_24 = arith.constant 0 : index
    %32 = vector.load %arg8[%c0_23, %c0_24] : memref<256x256xf32, #tpu.memory_space<vmem>>, vector<256x256xf32>
    %cst_25 = arith.constant dense<0.000000e+00> : vector<16x256xf32>
    %33 = tpu.matmul %21, %32, %cst_25 {dimension_numbers = #tpu.dot_dimension_numbers<[1], [0], [0], [1], [0, 0, 1, 1], [], []>} : vector<16x256xf32>, vector<256x256xf32>, vector<16x256xf32> -> vector<16x256xf32>
    %34 = arith.addf %31, %33 : vector<16x256xf32>
    %35 = vector.extract_strided_slice %34 {offsets = [0, 0], sizes = [16, 128], strides = [1, 1]} : vector<16x256xf32> to vector<16x128xf32>
    %36 = vector.extract_strided_slice %34 {offsets = [0, 128], sizes = [16, 128], strides = [1, 1]} : vector<16x256xf32> to vector<16x128xf32>
    %37 = arith.mulf %35, %35 : vector<16x128xf32>
    %38 = arith.mulf %36, %36 : vector<16x128xf32>
    %39 = arith.addf %37, %38 : vector<16x128xf32>
    %cst_26 = arith.constant 9.99999968E-21 : f32
    %40 = vector.broadcast %cst_26 : f32 to vector<16x128xf32>
    %41 = arith.maximumf %39, %40 : vector<16x128xf32>
    %42 = math.log %41 : vector<16x128xf32>
    %cst_27 = arith.constant 2.17147231 : f32
    %43 = vector.broadcast %cst_27 : f32 to vector<16x128xf32>
    %44 = arith.mulf %43, %42 : vector<16x128xf32>
    %c64_i32 = arith.constant 64 : i32
    %45 = tpu.dynamic_rotate %39 by %c64_i32 dim 1 : vector<16x128xf32>, i32 -> vector<16x128xf32>
    %c64_i32_28 = arith.constant 64 : i32
    %46 = tpu.dynamic_rotate %35 by %c64_i32_28 dim 1 : vector<16x128xf32>, i32 -> vector<16x128xf32>
    %c64_i32_29 = arith.constant 64 : i32
    %47 = tpu.dynamic_rotate %36 by %c64_i32_29 dim 1 : vector<16x128xf32>, i32 -> vector<16x128xf32>
    %48 = arith.mulf %35, %46 : vector<16x128xf32>
    %49 = arith.mulf %36, %47 : vector<16x128xf32>
    %50 = arith.addf %48, %49 : vector<16x128xf32>
    %51 = arith.mulf %36, %46 : vector<16x128xf32>
    %52 = arith.mulf %35, %47 : vector<16x128xf32>
    %53 = arith.subf %51, %52 : vector<16x128xf32>
    %54 = arith.mulf %39, %45 : vector<16x128xf32>
    %cst_30 = arith.constant 1.000000e-30 : f32
    %55 = vector.broadcast %cst_30 : f32 to vector<16x128xf32>
    %56 = arith.addf %54, %55 : vector<16x128xf32>
    %57 = math.rsqrt %56 : vector<16x128xf32>
    %58 = arith.mulf %39, %57 : vector<16x128xf32>
    %cst_31 = arith.constant 0.000000e+00 : f32
    %59 = vector.broadcast %cst_31 : f32 to vector<16x128xf32>
    %60 = arith.cmpf ogt, %54, %59 : vector<16x128xf32>
    %61 = arith.mulf %50, %57 : vector<16x128xf32>
    %cst_32 = arith.constant 1.000000e+00 : f32
    %62 = vector.broadcast %cst_32 : f32 to vector<16x128xf32>
    %63 = arith.select %60, %61, %62 : vector<16x128xi1>, vector<16x128xf32>
    %64 = arith.mulf %53, %57 : vector<16x128xf32>
    %cst_33 = arith.constant 0.000000e+00 : f32
    %65 = vector.broadcast %cst_33 : f32 to vector<16x128xf32>
    %66 = arith.select %60, %64, %65 : vector<16x128xi1>, vector<16x128xf32>
    %67 = arith.mulf %26, %28 : vector<16x128xf32>
    %68 = arith.mulf %27, %29 : vector<16x128xf32>
    %69 = arith.addf %67, %68 : vector<16x128xf32>
    %70 = arith.mulf %27, %28 : vector<16x128xf32>
    %71 = arith.mulf %26, %29 : vector<16x128xf32>
    %72 = arith.subf %70, %71 : vector<16x128xf32>
    %73 = arith.mulf %69, %69 : vector<16x128xf32>
    %74 = arith.mulf %72, %72 : vector<16x128xf32>
    %75 = arith.addf %73, %74 : vector<16x128xf32>
    %cst_34 = arith.constant 1.000000e-30 : f32
    %76 = vector.broadcast %cst_34 : f32 to vector<16x128xf32>
    %77 = arith.addf %75, %76 : vector<16x128xf32>
    %78 = math.rsqrt %77 : vector<16x128xf32>
    %79 = arith.mulf %69, %78 : vector<16x128xf32>
    %80 = arith.mulf %72, %78 : vector<16x128xf32>
    %c0_i32 = arith.constant 0 : i32
    %81 = vector.broadcast %c0_i32 : i32 to vector<1x128xi32>
    %82 = arith.cmpi eq, %0, %81 : vector<1x128xi32>
    %83 = arith.mulf %26, %28 : vector<16x128xf32>
    %cst_35 = arith.constant 0.000000e+00 : f32
    %84 = vector.broadcast %cst_35 : f32 to vector<16x128xf32>
    %85 = arith.cmpf oge, %83, %84 : vector<16x128xf32>
    %cst_36 = arith.constant 1.000000e+00 : f32
    %cst_37 = arith.constant -1.000000e+00 : f32
    %86 = vector.broadcast %cst_36 : f32 to vector<16x128xf32>
    %87 = vector.broadcast %cst_37 : f32 to vector<16x128xf32>
    %88 = arith.select %85, %86, %87 : vector<16x128xi1>, vector<16x128xf32>
    %89 = vector.shape_cast %82 : vector<1x128xi1> to vector<1x128xi1>
    %90 = vector.broadcast %89 : vector<1x128xi1> to vector<16x128xi1>
    %91 = arith.select %90, %88, %79 : vector<16x128xi1>, vector<16x128xf32>
    %92 = arith.mulf %27, %29 : vector<16x128xf32>
    %cst_38 = arith.constant 0.000000e+00 : f32
    %93 = vector.broadcast %cst_38 : f32 to vector<16x128xf32>
    %94 = arith.cmpf oge, %92, %93 : vector<16x128xf32>
    %cst_39 = arith.constant 1.000000e+00 : f32
    %cst_40 = arith.constant -1.000000e+00 : f32
    %95 = vector.broadcast %cst_39 : f32 to vector<16x128xf32>
    %96 = vector.broadcast %cst_40 : f32 to vector<16x128xf32>
    %97 = arith.select %94, %95, %96 : vector<16x128xi1>, vector<16x128xf32>
    %98 = vector.shape_cast %82 : vector<1x128xi1> to vector<1x128xi1>
    %99 = vector.broadcast %98 : vector<1x128xi1> to vector<16x128xi1>
    %100 = arith.select %99, %97, %80 : vector<16x128xi1>, vector<16x128xf32>
    %101 = tpu.concatenate %91, %100 in 1 : vector<16x128xf32>, vector<16x128xf32> -> vector<16x256xf32>
    %c0_41 = arith.constant 0 : index
    %c0_42 = arith.constant 0 : index
    %102 = vector.load %arg9[%c0_41, %c0_42] : memref<256x128xf32, #tpu.memory_space<vmem>>, vector<256x128xf32>
    %cst_43 = arith.constant dense<0.000000e+00> : vector<16x128xf32>
    %103 = tpu.matmul %101, %102, %cst_43 {dimension_numbers = #tpu.dot_dimension_numbers<[1], [0], [0], [1], [0, 0, 1, 1], [], []>} : vector<16x256xf32>, vector<256x128xf32>, vector<16x128xf32> -> vector<16x128xf32>
    %c64_i32_44 = arith.constant 64 : i32
    %104 = vector.broadcast %c64_i32_44 : i32 to vector<1x128xi32>
    %105 = arith.cmpi slt, %0, %104 : vector<1x128xi32>
    %c0_45 = arith.constant 0 : index
    %c0_46 = arith.constant 0 : index
    %c0_47 = arith.constant 0 : index
    %106 = vector.load %arg10[%c0_45, %c0_46, %c0_47] : memref<1x16x384xf32, #tpu.memory_space<vmem>>, vector<1x16x128xf32>
    %107 = vector.shape_cast %106 : vector<1x16x128xf32> to vector<16x128xf32>
    %108 = vector.shape_cast %44 : vector<16x128xf32> to vector<1x16x128xf32>
    tpu.vector_store %arg10[%c0_45, %c0_46, %c0_47], %108 {strides = array<i32>} : memref<1x16x384xf32, #tpu.memory_space<vmem>>, vector<1x16x128xf32>,
    %c64_i32_48 = arith.constant 64 : i32
    %109 = tpu.dynamic_rotate %66 by %c64_i32_48 dim 1 : vector<16x128xf32>, i32 -> vector<16x128xf32>
    %110 = vector.shape_cast %105 : vector<1x128xi1> to vector<1x128xi1>
    %111 = vector.broadcast %110 : vector<1x128xi1> to vector<16x128xi1>
    %112 = arith.select %111, %58, %109 : vector<16x128xi1>, vector<16x128xf32>
    %c0_49 = arith.constant 0 : index
    %c0_50 = arith.constant 0 : index
    %c128 = arith.constant 128 : index
    %113 = vector.load %arg10[%c0_49, %c0_50, %c128] : memref<1x16x384xf32, #tpu.memory_space<vmem>>, vector<1x16x128xf32>
    %114 = vector.shape_cast %113 : vector<1x16x128xf32> to vector<16x128xf32>
    %115 = vector.shape_cast %112 : vector<16x128xf32> to vector<1x16x128xf32>
    tpu.vector_store %arg10[%c0_49, %c0_50, %c128], %115 {strides = array<i32>} : memref<1x16x384xf32, #tpu.memory_space<vmem>>, vector<1x16x128xf32>,
    %116 = vector.shape_cast %105 : vector<1x128xi1> to vector<1x128xi1>
    %117 = vector.broadcast %116 : vector<1x128xi1> to vector<16x128xi1>
    %118 = arith.select %117, %63, %103 : vector<16x128xi1>, vector<16x128xf32>
    %c0_51 = arith.constant 0 : index
    %c0_52 = arith.constant 0 : index
    %c256 = arith.constant 256 : index
    %119 = vector.load %arg10[%c0_51, %c0_52, %c256] : memref<1x16x384xf32, #tpu.memory_space<vmem>>, vector<1x16x128xf32>
    %120 = vector.shape_cast %119 : vector<1x16x128xf32> to vector<16x128xf32>
    %121 = vector.shape_cast %118 : vector<16x128xf32> to vector<1x16x128xf32>
    tpu.vector_store %arg10[%c0_51, %c0_52, %c256], %121 {strides = array<i32>} : memref<1x16x384xf32, #tpu.memory_space<vmem>>, vector<1x16x128xf32>,
    %cst_53 = arith.constant dense<0xFF800000> : vector<128xf32>
    %122 = vector.multi_reduction <maximumf>, %44, %cst_53 [0] : vector<16x128xf32> to vector<128xf32>
    %123 = vector.shape_cast %122 : vector<128xf32> to vector<1x128xf32>
    %124 = vector.shape_cast %123 : vector<1x128xf32> to vector<1x128xf32>
    %125 = vector.broadcast %124 : vector<1x128xf32> to vector<8x128xf32>
    %c0_54 = arith.constant 0 : index
    %c0_55 = arith.constant 0 : index
    %c0_56 = arith.constant 0 : index
    %c0_57 = arith.constant 0 : index
    %126 = vector.load %arg11[%c0_54, %c0_55, %c0_56, %c0_57] : memref<1x1x8x128xf32, #tpu.memory_space<vmem>>, vector<1x1x8x128xf32>
    %127 = vector.shape_cast %126 : vector<1x1x8x128xf32> to vector<8x128xf32>
    %128 = vector.shape_cast %125 : vector<8x128xf32> to vector<1x1x8x128xf32>
    tpu.vector_store %arg11[%c0_54, %c0_55, %c0_56, %c0_57], %128 {strides = array<i32>} : memref<1x1x8x128xf32, #tpu.memory_space<vmem>>, vector<1x1x8x128xf32>,
    return
  }
  func.func @transform_0(%arg0: i32, %arg1: i32) -> (i32, i32, i32) {
    %c0_i32 = arith.constant 0 : i32
    %c0_i32_0 = arith.constant 0 : i32
    return %arg0, %arg1, %c0_i32 : i32, i32, i32
  }
  func.func @transform_1(%arg0: i32, %arg1: i32) -> (i32, i32, i32) {
    %c0_i32 = arith.constant 0 : i32
    %c0_i32_0 = arith.constant 0 : i32
    return %arg0, %arg1, %c0_i32 : i32, i32, i32
  }
  func.func @transform_2(%arg0: i32, %arg1: i32) -> (i32, i32, i32, i32) {
    %c0_i32 = arith.constant 0 : i32
    %c0_i32_0 = arith.constant 0 : i32
    %c0_i32_1 = arith.constant 0 : i32
    return %arg0, %arg1, %c0_i32, %c0_i32_0 : i32, i32, i32, i32
  }
  func.func @transform_3(%arg0: i32, %arg1: i32) -> (i32, i32, i32, i32) {
    %c0_i32 = arith.constant 0 : i32
    %c0_i32_0 = arith.constant 0 : i32
    %c0_i32_1 = arith.constant 0 : i32
    return %arg0, %arg1, %c0_i32, %c0_i32_0 : i32, i32, i32, i32
  }
  func.func @transform_4(%arg0: i32, %arg1: i32) -> (i32, i32) {
    %c0_i32 = arith.constant 0 : i32
    %c0_i32_0 = arith.constant 0 : i32
    %c0_i32_1 = arith.constant 0 : i32
    return %c0_i32, %c0_i32_0 : i32, i32
  }
  func.func @transform_5(%arg0: i32, %arg1: i32) -> (i32, i32) {
    %c0_i32 = arith.constant 0 : i32
    %c0_i32_0 = arith.constant 0 : i32
    %c0_i32_1 = arith.constant 0 : i32
    return %c0_i32, %c0_i32_0 : i32, i32
  }
  func.func @transform_6(%arg0: i32, %arg1: i32) -> (i32, i32) {
    %c0_i32 = arith.constant 0 : i32
    %c0_i32_0 = arith.constant 0 : i32
    %c0_i32_1 = arith.constant 0 : i32
    return %c0_i32, %c0_i32_0 : i32, i32
  }
  func.func @transform_7(%arg0: i32, %arg1: i32) -> (i32, i32) {
    %c0_i32 = arith.constant 0 : i32
    %c0_i32_0 = arith.constant 0 : i32
    %c0_i32_1 = arith.constant 0 : i32
    return %c0_i32, %c0_i32_0 : i32, i32
  }
  func.func @transform_8(%arg0: i32, %arg1: i32) -> (i32, i32, i32) {
    %c0_i32 = arith.constant 0 : i32
    %c0_i32_0 = arith.constant 0 : i32
    return %arg0, %arg1, %c0_i32 : i32, i32, i32
  }
  func.func @transform_9(%arg0: i32, %arg1: i32) -> (i32, i32, i32, i32) {
    %c0_i32 = arith.constant 0 : i32
    %c0_i32_0 = arith.constant 0 : i32
    %c0_i32_1 = arith.constant 0 : i32
    return %arg0, %arg1, %c0_i32, %c0_i32_0 : i32, i32, i32, i32
  }
}

</mosaic_0001>

<bundles_post_ra>
// kernel: a_call__.1
= control target key start
LH: loop header
LB: loop body
LE: loop exit
PB: predicated region body
PF: predicated region fallthrough
CT: control target
= control target key end

     0   :  { %15 = vsyncpa [#allocation3], 0  ;;  %s2783_s0 = inlined_call_operand.vmem [shape: f32[2,17,128], index: 0, kind: input, shape index: {}]   ;;  %s2784_s1 = inlined_call_operand.vmem [shape: f32[2,17,128], index: 1, kind: input, shape index: {}]   ;;  %s2785_s2 = inlined_call_operand.vmem [shape: f32[2,1,8,128], index: 2, kind: input, shape index: {}]   ;;  %s2786_s3 = inlined_call_operand.vmem [shape: f32[2,1,8,128], index: 3, kind: input, shape index: {}]   ;;  %s2787_s4 = inlined_call_operand.hbm [shape: f32[256,256], index: 4, kind: input, shape index: {}]   ;;  %s2788_s5 = inlined_call_operand.hbm [shape: f32[256,256], index: 5, kind: input, shape index: {}]   ;;  %s2789_s6 = inlined_call_operand.vmem [shape: f32[256,256], index: 6, kind: input, shape index: {}]   ;;  %s2790_s7 = inlined_call_operand.hbm [shape: f32[256,128], index: 7, kind: input, shape index: {}]   ;;  %s2791_s8 = inlined_call_operand.vmem [shape: f32[2,16,384], index: 8, kind: output, shape index: {0}]   ;;  %s2792_s9 = inlined_call_operand.vmem [shape: f32[2,1,8,128], index: 9, kind: output, shape index: {1}]  }
   0x1   :  { %16 = vsyncpa [#allocation5], 0  ;;  %s2162_s30 = smov 0   ;;  %s2164_s10 = smov 0  }
   0x2   :  { %s2166_s11 = smov 0  }
   0x3 LB: > { %2797 = sst [smem:[#allocation9_spill]] %s2097_s10  ;;  %s1545_s12 = sadd.s32 4294967295, %s2101_s11   ;;  %s2101_s11 = sphi %s2166_s11, %s22_s11   ;;  %s2097_s10 = sphi %s2164_s10, %s2806_s10   ;;  %s2093_s30 = sphi %s2162_s30, %s2805_s30  }
   0x4   : > { %p1547_p0 = scmp.ge.s32.totalorder %s2101_s11, 1  ;;  %p291_p1 = scmp.lt.s32.totalorder %s2101_s11, 3 }
   0x5   : > { %p2180_p2 = scmp.eq.s32.totalorder %s1545_s12, 0  ;;  %s2103_s15 = smov [#allocation4]  }
   0x6   : > { %p2184_p3 = pnand %p1547_p0, %p291_p1  ;;  %s316_s16 = sshll.u32 %s2103_s15, 4  ;;  %s2188_s16 = int_to_ptr.vmem [resolvable:$true] %s316_s16 }
   0x7   : > { %s2798_s13 = scalar_select %p2180_p2, 1, 0 }
   0x8   : > { %s2799_s14 = scalar_select %p2184_p3, 1, 0 }
   0x9   : > { %p1926_p4 = pneg %p2184_p3  ;;  %s34_s18 = sadd.s32 1, %s2097_s10 }
   0xa   : > { %p2199_p6 = scmp.ge.s32.totalorder %s34_s18, 2  ;;  %s2104_s20 = smov [#allocation2]  }
   0xb   : > { %p2194_p5 = pnand %p2180_p2, %p1926_p4  ;;  %s303_s21 = sshll.u32 %s2104_s20, 4  ;;  %s304_s21 = int_to_ptr.vmem [resolvable:$true] %s303_s21 }
   0xc   : > { %s1987_s24 = scalar_lea.hbm %s2788_s5, 8192 }
   0xd   : > { %p1988_p7 = scmp.ne.s32.totalorder %s2788_s5, %s1987_s24  ;;  %p2211_p8 = pneg %p2194_p5 }
   0xe   : > { %p1994_p11 = scmp.lt.u32.totalorder %s1987_s24, %s2788_s5 }
   0xf   : > { %p1990_p9 = pnand %p2211_p8, %p1988_p7 }
  0x11   : > { %p1991_p10 = pneg %p1990_p9 }
  0x13   : > { %p1996_p12 = pnand %p1994_p11, %p1991_p10 }
  0x15   : > { %1999 = shalt.err (!%p1996_p12)
}
  0x16   : > { %s2000_s12 = scalar_lea.vmem %s2188_s16, 8192  ;;  %p2008_p4 = scmp.lt.s32.totalorder %s2188_s16, %s2188_s16 }
  0x17   : > { %p2001_p13 = scmp.ne.s32.totalorder %s2188_s16, %s2000_s12  ;;  %p2009_p2 = scmp.lt.s32.totalorder %s2000_s12, %s2000_s12 }
  0x19   : > { %p2003_p0 = pnand %p2001_p13, %p2211_p8  ;;  %p2010_p7 = por %p2009_p2, %p2008_p4 }
  0x1b   : > { %p2004_p1 = pneg %p2003_p0 }
  0x1d   : > { %p2011_p9 = pnand %p2010_p7, %p2004_p1 }
  0x1f   : > { %2014 = shalt.err (!%p2011_p9)
}
  0x20   : > { %s2105_s15 = smov 256   ;;  %s2106_s20 = smov 16  }
  0x21   : > { %1932 = dma.hbm_to_vmem [thread:$0]  (!%p2194_p5), %s2788_s5, 8192, %s2188_s16, [#allocation5], %s2105_s15, %s2105_s15, %s2106_s20  }
  0x22   : > { %s2808_s18 = smov (%p2199_p6, %s34_s18), 0  ;;  %s2015_s26 = scalar_lea.hbm %s2787_s4, 8192 }
  0x23   : > { %p2016_p2 = scmp.ne.s32.totalorder %s2787_s4, %s2015_s26  ;;  %p2022_p12 = scmp.lt.u32.totalorder %s2015_s26, %s2787_s4 }
  0x25   : > { %p2018_p10 = pnand %p2016_p2, %p2211_p8 }
  0x27   : > { %p2019_p11 = pneg %p2018_p10 }
  0x29   : > { %p2024_p13 = pnand %p2022_p12, %p2019_p11 }
  0x2b   : > { %2027 = shalt.err (!%p2024_p13)
}
  0x2c   : > { %s2028_s16 = scalar_lea.vmem %s304_s21, 8192  ;;  %p2036_p4 = scmp.lt.s32.totalorder %s304_s21, %s304_s21 }
  0x2d   : > { %p2029_p6 = scmp.ne.s32.totalorder %s304_s21, %s2028_s16  ;;  %p2037_p7 = scmp.lt.s32.totalorder %s2028_s16, %s2028_s16 }
  0x2f   : > { %p2031_p0 = pnand %p2029_p6, %p2211_p8  ;;  %p2038_p9 = por %p2037_p7, %p2036_p4 }
  0x31   : > { %p2032_p1 = pneg %p2031_p0 }
  0x33   : > { %p2039_p3 = pnand %p2038_p9, %p2032_p1 }
  0x35   : > { %2042 = shalt.err (!%p2039_p3)
}
  0x36   : > { %1929 = dma.hbm_to_vmem [thread:$0]  (!%p2194_p5), %s2787_s4, 8192, %s304_s21, [#allocation3], %s2105_s15, %s2105_s15, %s2106_s20  }
  0x37   : > { %s2107_s10 = smov [#allocation6]   ;;  %s2043_s26 = scalar_lea.hbm %s2790_s7, 4096 }
  0x38   : > { %s332_s23 = sshll.u32 %s2107_s10, 4  ;;  %p2044_p2 = scmp.ne.s32.totalorder %s2790_s7, %s2043_s26  ;;  %s333_s23 = int_to_ptr.vmem [resolvable:$true] %s332_s23 }
  0x39   : > { %p2050_p11 = scmp.lt.u32.totalorder %s2043_s26, %s2790_s7 }
  0x3a   : > { %p2046_p3 = pnand %p2044_p2, %p2211_p8 }
  0x3c   : > { %p2047_p10 = pneg %p2046_p3 }
  0x3e   : > { %p2052_p12 = pnand %p2050_p11, %p2047_p10 }
  0x40   : > { %2055 = shalt.err (!%p2052_p12)
}
  0x41   : > { %s2056_s21 = scalar_lea.vmem %s333_s23, 4096  ;;  %p2064_p1 = scmp.lt.s32.totalorder %s333_s23, %s333_s23 }
  0x42   : > { %p2057_p13 = scmp.ne.s32.totalorder %s333_s23, %s2056_s21  ;;  %p2065_p4 = scmp.lt.s32.totalorder %s2056_s21, %s2056_s21 }
  0x44   : > { %p2059_p6 = pnand %p2057_p13, %p2211_p8  ;;  %p2066_p7 = por %p2065_p4, %p2064_p1 }
  0x46   : > { %p2060_p0 = pneg %p2059_p6 }
  0x48   : > { %p2067_p9 = pnand %p2066_p7, %p2060_p0 }
  0x4a   : > { %2070 = shalt.err (!%p2067_p9)
}
  0x4b   : > { %s2108_s15 = smov 128   ;;  %s2109_s20 = smov 8  }
  0x4c   : > { %1935 = dma.hbm_to_vmem [thread:$0]  (!%p2194_p5), %s2790_s7, 4096, %s333_s23, [#allocation5], %s2108_s15, %s2108_s15, %s2109_s20  }
  0x4d   : > { %p2803_p2 = scmp.ne.s32.totalorder %s2799_s14, 0 }
  0x4e   : > { %p2804_p3 = scmp.ne.s32.totalorder (!%p2803_p2), %s2798_s13, 0 }
  0x4f   : > { %410 = sbr.rel (%p2803_p2) target bundleno = 693 (0x2b5), region = 52 }
  0x56   : > { %2084 = dma.done.wait (%p2804_p3), [#allocation3], 8192  }
  0x57   : > { %2086 = vsyncadd (%p2804_p3), [#allocation3], 4294959104 }
  0x58   : > { %2088 = dma.done.wait (%p2804_p3), [#allocation5], 12288  }
  0x59   : > { %2090 = vsyncadd (%p2804_p3), [#allocation5], 4294955008  ;;  %v604_v0 = vld [vmem:[#allocation2 + $0x8] sm:$0xff]  ;;  %v606_v1 = vld [vmem:[#allocation2 + $0x18] sm:$0xff]  ;;  %p506_p5 = scmp.lt.s32.totalorder %s2093_s30, 1 }
  0x5a   : > { %v886_v2 = vld [vmem:[%s2789_s6 + $0x8] sm:$0xff]  ;;  %v2285_v3 = vpack.c.bf16 %v606_v1, %v604_v0  ;;  %v888_v4 = vld [vmem:[%s2789_s6 + $0x18] sm:$0xff]  ;;  %v603_v5 = vld [vmem:[#allocation2] sm:$0xff] }
  0x5b   : > { %v605_v6 = vld [vmem:[#allocation2 + $0x10] sm:$0xff]  ;;  %v1732_v7 = vpack.c.bf16 %v888_v4, %v886_v2  ;;  %v885_v9 = vld [vmem:[%s2789_s6] sm:$0xff]  ;;  %v608_v11 = vld [vmem:[#allocation2 + $0x28] sm:$0xff]  ;;  %s2810_s30 = smov (!%p506_p5, %s2093_s30), 1 }
  0x5c   : > { %v2290_v8 = vpack.c.bf16 %v605_v6, %v603_v5  ;;  %v887_v10 = vld [vmem:[%s2789_s6 + $0x10] sm:$0xff]  ;;  %1605 = vmatprep.subr.bf16.mxu1 %v2285_v3  ;;  %v610_v13 = vld [vmem:[#allocation2 + $0x38] sm:$0xff]  ;;  %v890_v14 = vld [vmem:[%s2789_s6 + $0x28] sm:$0xff]  ;;  %s1912_s16 = smul.u32 24, %s2810_s30  ;;  %s2613_s28 = sshll.u32 %s2810_s30, 3 }
  0x5d   : > { %v1734_v12 = vpack.c.bf16 %v887_v10, %v885_v9  ;;  %v892_v15 = vld [vmem:[%s2789_s6 + $0x38] sm:$0xff]  ;;  %1733 = vmatprep.subr.bf16.mxu0 %v1732_v7  ;;  %v2306_v16 = vpack.c.bf16 %v610_v13, %v608_v11  ;;  %v607_v18 = vld [vmem:[#allocation2 + $0x20] sm:$0xff]  ;;  %v609_v19 = vld [vmem:[#allocation2 + $0x30] sm:$0xff]  ;;  %s543_s21 = scalar_lea.vmem %s2785_s2, %s2613_s28  ;;  %s550_s19 = scalar_lea.vmem %s2786_s3, %s2613_s28 }
  0x5e   : > { %1607 = vmatpush1.bf16.msra.mxu1 %v2290_v8  ;;  %v1736_v17 = vpack.c.bf16 %v892_v15, %v890_v14  ;;  %v889_v20 = vld [vmem:[%s2789_s6 + $0x20] sm:$0xff]  ;;  %v2311_v21 = vpack.c.bf16 %v609_v19, %v607_v18  ;;  %v891_v22 = vld [vmem:[%s2789_s6 + $0x30] sm:$0xff]  ;;  %v612_v23 = vld [vmem:[#allocation2 + $0x48] sm:$0xff]  ;;  %s513_s13 = scalar_lea.vmem %s2783_s0, %s1912_s16  ;;  %s531_s29 = scalar_lea.vmem %s2784_s1, %s1912_s16 }
  0x5f   : > { %1735 = vmatpush1.bf16.msra.mxu0 %v1734_v12  ;;  %v614_v24 = vld [vmem:[#allocation2 + $0x58] sm:$0xff]  ;;  %1609 = vmatprep.subr.bf16.mxu1 %v2306_v16  ;;  %v1738_v25 = vpack.c.bf16 %v891_v22, %v889_v20  ;;  %v894_v27 = vld [vmem:[%s2789_s6 + $0x48] sm:$0xff]  ;;  %v611_v29 = vld [vmem:[#allocation2 + $0x40] sm:$0xff]  ;;  %s2110_s16 = smov 64   ;;  %s1913_s22 = smul.u32 48, %s2810_s30 }
  0x60   : > { %1737 = vmatprep.subr.bf16.mxu0 %v1736_v17  ;;  %v2317_v26 = vpack.c.bf16 %v614_v24, %v612_v23  ;;  %v896_v28 = vld [vmem:[%s2789_s6 + $0x58] sm:$0xff]  ;;  %v613_v31 = vld [vmem:[#allocation2 + $0x50] sm:$0xff]  ;;  %v893_v32 = vld [vmem:[%s2789_s6 + $0x40] sm:$0xff]  ;;  %s568_s23 = scalar_lea.vmem %s2792_s9, %s2613_s28 }
  0x61   : > { %v1740_v30 = vpack.c.bf16 %v896_v28, %v894_v27  ;;  %v895_v33 = vld [vmem:[%s2789_s6 + $0x50] sm:$0xff]  ;;  %v2332_v34 = vpack.c.bf16 %v613_v31, %v611_v29  ;;  %v616_v35 = vld [vmem:[#allocation2 + $0x68] sm:$0xff]  ;;  %v618_v36 = vld [vmem:[#allocation2 + $0x78] sm:$0xff]  ;;  %s2737_s14 = scalar_lea.vmem %s2791_s8, %s1913_s22 }
  0x62   : > { %1611 = vmatpush1.bf16.msra.mxu1 %v2311_v21  ;;  %v898_v37 = vld [vmem:[%s2789_s6 + $0x68] sm:$0xff]  ;;  %v1742_v38 = vpack.c.bf16 %v895_v33, %v893_v32  ;;  %v2338_v39 = vpack.c.bf16 %v618_v36, %v616_v35  ;;  %v900_v40 = vld [vmem:[%s2789_s6 + $0x78] sm:$0xff]  ;;  %v615_v41 = vld [vmem:[#allocation2 + $0x60] sm:$0xff] }
  0x63   : > { %1739 = vmatpush1.bf16.msra.mxu0 %v1738_v25  ;;  %1613 = vmatprep.subr.bf16.mxu1 %v2317_v26  ;;  %v617_v42 = vld [vmem:[#allocation2 + $0x70] sm:$0xff]  ;;  %v1744_v43 = vpack.c.bf16 %v900_v40, %v898_v37  ;;  %v897_v44 = vld [vmem:[%s2789_s6 + $0x60] sm:$0xff]  ;;  %v620_v46 = vld [vmem:[#allocation2 + $0x88] sm:$0xff] }
  0x64   : > { %1741 = vmatprep.subr.bf16.mxu0 %v1740_v30  ;;  %v899_v45 = vld [vmem:[%s2789_s6 + $0x70] sm:$0xff]  ;;  %v622_v47 = vld [vmem:[#allocation2 + $0x98] sm:$0xff]  ;;  %v902_v48 = vld [vmem:[%s2789_s6 + $0x88] sm:$0xff]  ;;  %v2356_v50 = vpack.c.bf16 %v617_v42, %v615_v41 }
  0x65   : > { %v904_v49 = vld [vmem:[%s2789_s6 + $0x98] sm:$0xff]  ;;  %v1746_v51 = vpack.c.bf16 %v899_v45, %v897_v44  ;;  %v2359_v52 = vpack.c.bf16 %v622_v47, %v620_v46  ;;  %v619_v53 = vld [vmem:[#allocation2 + $0x80] sm:$0xff]  ;;  %v621_v54 = vld [vmem:[#allocation2 + $0x90] sm:$0xff] }
  0x66   : > { %1615 = vmatpush1.bf16.msra.mxu1 %v2332_v34  ;;  %v901_v55 = vld [vmem:[%s2789_s6 + $0x80] sm:$0xff]  ;;  %v1748_v56 = vpack.c.bf16 %v904_v49, %v902_v48  ;;  %v903_v57 = vld [vmem:[%s2789_s6 + $0x90] sm:$0xff]  ;;  %v624_v58 = vld [vmem:[#allocation2 + $0xa8] sm:$0xff]  ;;  %v2374_v62 = vpack.c.bf16 %v621_v54, %v619_v53 }
  0x67   : > { %1743 = vmatpush1.bf16.msra.mxu0 %v1742_v38  ;;  %1617 = vmatprep.subr.bf16.mxu1 %v2338_v39  ;;  %v626_v59 = vld [vmem:[#allocation2 + $0xb8] sm:$0xff]  ;;  %v906_v60 = vld [vmem:[%s2789_s6 + $0xa8] sm:$0xff]  ;;  %v1750_v63 = vpack.c.bf16 %v903_v57, %v901_v55  ;;  %v623_v1 = vld [vmem:[#allocation2 + $0xa0] sm:$0xff] }
  0x68   : > { %1745 = vmatprep.subr.bf16.mxu0 %v1744_v43  ;;  %v908_v61 = vld [vmem:[%s2789_s6 + $0xb8] sm:$0xff]  ;;  %v2377_v0 = vpack.c.bf16 %v626_v59, %v624_v58  ;;  %v625_v2 = vld [vmem:[#allocation2 + $0xb0] sm:$0xff]  ;;  %v905_v4 = vld [vmem:[%s2789_s6 + $0xa0] sm:$0xff] }
  0x69   : > { %v1752_v5 = vpack.c.bf16 %v908_v61, %v906_v60  ;;  %v907_v6 = vld [vmem:[%s2789_s6 + $0xb0] sm:$0xff]  ;;  %v628_v7 = vld [vmem:[#allocation2 + $0xc8] sm:$0xff]  ;;  %v630_v9 = vld [vmem:[#allocation2 + $0xd8] sm:$0xff]  ;;  %v2392_v12 = vpack.c.bf16 %v625_v2, %v623_v1 }
  0x6a   : > { %1619 = vmatpush1.bf16.msra.mxu1 %v2356_v50  ;;  %v910_v10 = vld [vmem:[%s2789_s6 + $0xc8] sm:$0xff]  ;;  %v912_v11 = vld [vmem:[%s2789_s6 + $0xd8] sm:$0xff]  ;;  %v1754_v13 = vpack.c.bf16 %v907_v6, %v905_v4  ;;  %v2395_v14 = vpack.c.bf16 %v630_v9, %v628_v7  ;;  %v627_v15 = vld [vmem:[#allocation2 + $0xc0] sm:$0xff]  ;;  %v569_v6 = vlaneseq }
  0x6b   : > { %1747 = vmatpush1.bf16.msra.mxu0 %v1746_v51  ;;  %1621 = vmatprep.subr.bf16.mxu1 %v2359_v52  ;;  %v629_v17 = vld [vmem:[#allocation2 + $0xd0] sm:$0xff]  ;;  %v909_v18 = vld [vmem:[%s2789_s6 + $0xc0] sm:$0xff]  ;;  %v1756_v19 = vpack.c.bf16 %v912_v11, %v910_v10  ;;  %v632_v22 = vld [vmem:[#allocation2 + $0xe8] sm:$0xff] }
  0x6c   : > { %1749 = vmatprep.subr.bf16.mxu0 %v1748_v56  ;;  %v911_v20 = vld [vmem:[%s2789_s6 + $0xd0] sm:$0xff]  ;;  %v634_v23 = vld [vmem:[#allocation2 + $0xf8] sm:$0xff]  ;;  %v914_v24 = vld [vmem:[%s2789_s6 + $0xe8] sm:$0xff]  ;;  %v2410_v27 = vpack.c.bf16 %v629_v17, %v627_v15 }
  0x6d   : > { %v916_v25 = vld [vmem:[%s2789_s6 + $0xf8] sm:$0xff]  ;;  %v1758_v28 = vpack.c.bf16 %v911_v20, %v909_v18  ;;  %v2413_v29 = vpack.c.bf16 %v634_v23, %v632_v22  ;;  %v631_v30 = vld [vmem:[#allocation2 + $0xe0] sm:$0xff]  ;;  %v633_v31 = vld [vmem:[#allocation2 + $0xf0] sm:$0xff] }
  0x6e   : > { %1623 = vmatpush1.bf16.msra.mxu1 %v2374_v62  ;;  %v913_v32 = vld [vmem:[%s2789_s6 + $0xe0] sm:$0xff]  ;;  %v1760_v33 = vpack.c.bf16 %v916_v25, %v914_v24  ;;  %v915_v35 = vld [vmem:[%s2789_s6 + $0xf0] sm:$0xff]  ;;  %v636_v36 = vld [vmem:[#allocation2 + $0x108] sm:$0xff]  ;;  %v2429_v41 = vpack.c.bf16 %v633_v31, %v631_v30  ;;  %v2492_v24 = vshrl.u32 %v569_v6, 7 }
  0x6f   : > { %1751 = vmatpush1.bf16.msra.mxu0 %v1750_v63  ;;  %1625 = vmatprep.subr.bf16.mxu1 %v2377_v0  ;;  %v638_v37 = vld [vmem:[#allocation2 + $0x118] sm:$0xff]  ;;  %v918_v38 = vld [vmem:[%s2789_s6 + $0x108] sm:$0xff]  ;;  %v1762_v42 = vpack.c.bf16 %v915_v35, %v913_v32  ;;  %v635_v44 = vld [vmem:[#allocation2 + $0x100] sm:$0xff] }
  0x70   : > { %1753 = vmatprep.subr.bf16.mxu0 %v1752_v5  ;;  %v920_v40 = vld [vmem:[%s2789_s6 + $0x118] sm:$0xff]  ;;  %v2432_v43 = vpack.c.bf16 %v638_v37, %v636_v36  ;;  %v637_v45 = vld [vmem:[#allocation2 + $0x110] sm:$0xff]  ;;  %v917_v46 = vld [vmem:[%s2789_s6 + $0x100] sm:$0xff]  ;;  %vm580_vm0 = vcmp.lt.s32.totalorder %v2492_v24, 7 }
  0x71   : > { %v1764_v47 = vpack.c.bf16 %v920_v40, %v918_v38  ;;  %v919_v48 = vld [vmem:[%s2789_s6 + $0x110] sm:$0xff]  ;;  %v640_v49 = vld [vmem:[#allocation2 + $0x128] sm:$0xff]  ;;  %v642_v51 = vld [vmem:[#allocation2 + $0x138] sm:$0xff]  ;;  %v2452_v55 = vpack.c.bf16 %v637_v45, %v635_v44 }
  0x72   : > { %1627 = vmatpush1.bf16.msra.mxu1 %v2392_v12  ;;  %v922_v53 = vld [vmem:[%s2789_s6 + $0x128] sm:$0xff]  ;;  %v924_v54 = vld [vmem:[%s2789_s6 + $0x138] sm:$0xff]  ;;  %v1766_v56 = vpack.c.bf16 %v919_v48, %v917_v46  ;;  %v2455_v57 = vpack.c.bf16 %v642_v51, %v640_v49  ;;  %v639_v58 = vld [vmem:[#allocation2 + $0x120] sm:$0xff] }
  0x73   : > { %1755 = vmatpush1.bf16.msra.mxu0 %v1754_v13  ;;  %1629 = vmatprep.subr.bf16.mxu1 %v2395_v14  ;;  %v641_v59 = vld [vmem:[#allocation2 + $0x130] sm:$0xff]  ;;  %v921_v60 = vld [vmem:[%s2789_s6 + $0x120] sm:$0xff]  ;;  %v1768_v61 = vpack.c.bf16 %v924_v54, %v922_v53  ;;  %v644_v1 = vld [vmem:[#allocation2 + $0x148] sm:$0xff] }
  0x74   : > { %1757 = vmatprep.subr.bf16.mxu0 %v1756_v19  ;;  %v923_v63 = vld [vmem:[%s2789_s6 + $0x130] sm:$0xff]  ;;  %v646_v2 = vld [vmem:[#allocation2 + $0x158] sm:$0xff]  ;;  %v926_v4 = vld [vmem:[%s2789_s6 + $0x148] sm:$0xff]  ;;  %v2471_v7 = vpack.c.bf16 %v641_v59, %v639_v58 }
  0x75   : > { %v928_v5 = vld [vmem:[%s2789_s6 + $0x158] sm:$0xff]  ;;  %v1770_v9 = vpack.c.bf16 %v923_v63, %v921_v60  ;;  %v2474_v10 = vpack.c.bf16 %v646_v2, %v644_v1  ;;  %v643_v11 = vld [vmem:[#allocation2 + $0x140] sm:$0xff]  ;;  %v645_v13 = vld [vmem:[#allocation2 + $0x150] sm:$0xff] }
  0x76   : > { %1631 = vmatpush1.bf16.msra.mxu1 %v2410_v27  ;;  %v925_v15 = vld [vmem:[%s2789_s6 + $0x140] sm:$0xff]  ;;  %v1772_v17 = vpack.c.bf16 %v928_v5, %v926_v4  ;;  %v927_v18 = vld [vmem:[%s2789_s6 + $0x150] sm:$0xff]  ;;  %v648_v19 = vld [vmem:[#allocation2 + $0x168] sm:$0xff]  ;;  %v2495_v25 = vpack.c.bf16 %v645_v13, %v643_v11 }
  0x77   : > { %1759 = vmatpush1.bf16.msra.mxu0 %v1758_v28  ;;  %1633 = vmatprep.subr.bf16.mxu1 %v2413_v29  ;;  %v650_v20 = vld [vmem:[#allocation2 + $0x178] sm:$0xff]  ;;  %v930_v22 = vld [vmem:[%s2789_s6 + $0x168] sm:$0xff]  ;;  %v647_v28 = vld [vmem:[#allocation2 + $0x160] sm:$0xff]  ;;  %v1774_v32 = vpack.c.bf16 %v927_v18, %v925_v15 }
  0x78   : > { %1761 = vmatprep.subr.bf16.mxu0 %v1760_v33  ;;  %v932_v23 = vld [vmem:[%s2789_s6 + $0x178] sm:$0xff]  ;;  %v649_v30 = vld [vmem:[#allocation2 + $0x170] sm:$0xff]  ;;  %v929_v31 = vld [vmem:[%s2789_s6 + $0x160] sm:$0xff]  ;;  %v2504_v33 = vpack.c.bf16 %v650_v20, %v648_v19 }
  0x79   : > { %v931_v35 = vld [vmem:[%s2789_s6 + $0x170] sm:$0xff]  ;;  %v652_v36 = vld [vmem:[#allocation2 + $0x188] sm:$0xff]  ;;  %v654_v37 = vld [vmem:[#allocation2 + $0x198] sm:$0xff]  ;;  %v1776_v38 = vpack.c.bf16 %v932_v23, %v930_v22  ;;  %v2526_v49 = vpack.c.bf16 %v649_v30, %v647_v28 }
  0x7a   : > { %1635 = vmatpush1.bf16.msra.mxu1 %v2429_v41  ;;  %v934_v40 = vld [vmem:[%s2789_s6 + $0x188] sm:$0xff]  ;;  %v2515_v44 = vld [vmem:[%s513_s13] sm:$0xff]  ;;  %v2532_v58 = vpack.c.bf16 %v654_v37, %v652_v36  ;;  %v653_v60 = vld [vmem:[#allocation2 + $0x190] sm:$0xff] }
  0x7b   : > { %1763 = vmatpush1.bf16.msra.mxu0 %v1762_v42  ;;  %1637 = vmatprep.subr.bf16.mxu1 %v2432_v43  ;;  %v936_v42 = vld [vmem:[%s2789_s6 + $0x198] sm:$0xff]  ;;  %v2517_v45 = vld [vmem:[%s513_s13 + $0x8] sm:$0xff]  ;;  %v578_v46 = vrot.slane %v2515_v44, 1  ;;  %v651_v59 = vld [vmem:[#allocation2 + $0x180] sm:$0xff] }
  0x7c   : > { %1765 = vmatprep.subr.bf16.mxu0 %v1764_v47  ;;  %v2521_v47 = vld [vmem:[%s531_s29] sm:$0xff]  ;;  %v2523_v48 = vld [vmem:[%s531_s29 + $0x8] sm:$0xff]  ;;  %v579_v51 = vrot.slane %v2517_v45, 1  ;;  %v1780_v63 = vpack.c.bf16 %v936_v42, %v934_v40  ;;  %v935_v1 = vld [vmem:[%s2789_s6 + $0x190] sm:$0xff]  ;;  %v2565_v15 = vpack.c.bf16 %v653_v60, %v651_v59 }
  0x7d   : > { %v592_v53 = vrot.slane %v2521_v47, 1  ;;  %v593_v54 = vrot.slane %v2523_v48, 1  ;;  %v656_v2 = vld [vmem:[#allocation2 + $0x1a8] sm:$0xff]  ;;  %v658_v4 = vld [vmem:[#allocation2 + $0x1b8] sm:$0xff]  ;;  %v655_v19 = vld [vmem:[#allocation2 + $0x1a0] sm:$0xff] }
  0x7e   : > { %1639 = vmatpush1.bf16.msra.mxu1 %v2452_v55  ;;  %v2546_v5 = vsel %vm580_vm0, %v578_v46, %v579_v51  ;;  %v938_v11 = vld [vmem:[%s2789_s6 + $0x1a8] sm:$0xff]  ;;  %v940_v13 = vld [vmem:[%s2789_s6 + $0x1b8] sm:$0xff]  ;;  %v2568_v18 = vpack.c.bf16 %v658_v4, %v656_v2  ;;  %v657_v20 = vld [vmem:[#allocation2 + $0x1b0] sm:$0xff] }
  0x7f   : > { %1767 = vmatpush1.bf16.msra.mxu0 %v1766_v56  ;;  %1641 = vmatprep.subr.bf16.mxu1 %v2455_v57  ;;  %v1778_v56 = vpack.c.bf16 %v931_v35, %v929_v31  ;;  %v937_v22 = vld [vmem:[%s2789_s6 + $0x1a0] sm:$0xff]  ;;  %v1784_v23 = vpack.c.bf16 %v940_v13, %v938_v11  ;;  %v939_v28 = vld [vmem:[%s2789_s6 + $0x1b0] sm:$0xff]  ;;  %v660_v30 = vld [vmem:[#allocation2 + $0x1c8] sm:$0xff]  ;;  %v2583_v36 = vpack.c.bf16 %v657_v20, %v655_v19 }
  0x80   : > { %1769 = vmatprep.subr.bf16.mxu0 %v1768_v61  ;;  %v933_v61 = vld [vmem:[%s2789_s6 + $0x180] sm:$0xff]  ;;  %731 = vmatprep.mubr.f32.mxu1 %v2546_v5  ;;  %v662_v31 = vld [vmem:[#allocation2 + $0x1d8] sm:$0xff]  ;;  %v1786_v37 = vpack.c.bf16 %v939_v28, %v937_v22  ;;  %v661_v42 = vld [vmem:[#allocation2 + $0x1d0] sm:$0xff] }
  0x81   : > { %v944_v35 = vld [vmem:[%s2789_s6 + $0x1d8] sm:$0xff]  ;;  %v659_v40 = vld [vmem:[#allocation2 + $0x1c0] sm:$0xff]  ;;  %v943_v60 = vld [vmem:[%s2789_s6 + $0x1d0] sm:$0xff] }
  0x82   : > { %1643 = vmatpush1.bf16.msra.mxu1 %v2471_v7  ;;  %v948_v2 = vld [vmem:[%s2789_s6 + $0x1f8] sm:$0xff]  ;;  %v2601_v4 = vpack.c.bf16 %v661_v42, %v659_v40  ;;  %v665_v19 = vld [vmem:[#allocation2 + $0x1f0] sm:$0xff]  ;;  %v945_v22 = vld [vmem:[%s2789_s6 + $0x1e0] sm:$0xff] }
  0x83   : > { %1771 = vmatpush1.bf16.msra.mxu0 %v1770_v9  ;;  %1645 = vmatprep.subr.bf16.mxu1 %v2474_v10  ;;  %v2554_v9 = vsel %vm580_vm0, %v592_v53, %v593_v54  ;;  %v822_v28 = vld [vmem:[#allocation4 + $0x8] sm:$0xff]  ;;  %v821_v40 = vld [vmem:[#allocation4] sm:$0xff]  ;;  %v823_v42 = vld [vmem:[#allocation4 + $0x10] sm:$0xff] }
  0x84   : > { %1773 = vmatprep.subr.bf16.mxu0 %v1772_v17  ;;  %1013 = vmatprep.mubr.f32.mxu0 %v2554_v9  ;;  %v1782_v17 = vpack.c.bf16 %v935_v1, %v933_v61  ;;  %v664_v61 = vld [vmem:[#allocation2 + $0x1e8] sm:$0xff] }
  0x85   : > { %v946_v1 = vld [vmem:[%s2789_s6 + $0x1e8] sm:$0xff] }
  0x86   : > { %1647 = vmatpush1.bf16.msra.mxu1 %v2495_v25  ;;  %v1792_v20 = vpack.c.bf16 %v948_v2, %v946_v1  ;;  %v595_v1 = vsel %vm580_vm0, %v593_v54, %v592_v53  ;;  %v1563_v2 = vld [vmem:[%s550_s19] ss:$0 sm:$0xff] }
  0x87   : > { %1775 = vmatpush1.bf16.msra.mxu0 %v1774_v32  ;;  %1649 = vmatprep.subr.bf16.mxu1 %v2504_v33  ;;  %v942_v32 = vld [vmem:[%s2789_s6 + $0x1c8] sm:$0xff]  ;;  %v829_v54 = vld [vmem:[#allocation4 + $0x40] sm:$0xff] }
  0x88   : > { %1777 = vmatprep.subr.bf16.mxu0 %v1776_v38  ;;  %v2586_v38 = vpack.c.bf16 %v662_v31, %v660_v30  ;;  %v1788_v59 = vpack.c.bf16 %v944_v35, %v942_v32  ;;  %v824_v30 = vld [vmem:[#allocation4 + $0x18] sm:$0xff]  ;;  %v573_v32 = vadd.s32 8, %v2492_v24 }
  0x8a   : > { %1651 = vmatpush1.bf16.msra.mxu1 %v2526_v49  ;;  %vm575_vm1 = vcmp.eq.s32.totalorder %v573_v32, 15  ;;  %v835_v32 = vld [vmem:[#allocation4 + $0x70] sm:$0xff] }
  0x8b   : > { %1779 = vmatpush1.bf16.msra.mxu0 %v1778_v56  ;;  %1653 = vmatprep.subr.bf16.mxu1 %v2532_v58  ;;  %v941_v56 = vld [vmem:[%s2789_s6 + $0x1c0] sm:$0xff] }
  0x8c   : > { %1781 = vmatprep.subr.bf16.mxu0 %v1780_v63  ;;  %v666_v63 = vld [vmem:[#allocation2 + $0x1f8] sm:$0xff]  ;;  %v1790_v11 = vpack.c.bf16 %v943_v60, %v941_v56  ;;  %v826_v56 = vld [vmem:[#allocation4 + $0x28] sm:$0xff]  ;;  %v582_v60 = vsel %vm580_vm0, %v579_v51, %v578_v46 }
  0x8d   : > { %v2604_v13 = vpack.c.bf16 %v666_v63, %v664_v61  ;;  %v1562_v61 = vld [vmem:[%s543_s21] ss:$0 sm:$0xff]  ;;  %v1798_v63 = vpack.c.bf16 %v823_v42, %v821_v40  ;;  %v830_v46 = vld [vmem:[#allocation4 + $0x48] sm:$0xff]  ;;  %v832_v51 = vld [vmem:[#allocation4 + $0x58] sm:$0xff] }
  0x8e   : > { %1655 = vmatpush1.bf16.msra.mxu1 %v2565_v15  ;;  %v1804_v53 = vpack.c.bf16 %v832_v51, %v830_v46  ;;  %v839_v42 = vld [vmem:[#allocation4 + $0x90] sm:$0xff]  ;;  %v849_v46 = vld [vmem:[#allocation4 + $0xe0] sm:$0xff]  ;;  %v854_v51 = vld [vmem:[#allocation4 + $0x108] sm:$0xff] }
  0x8f   : > { %1783 = vmatpush1.bf16.msra.mxu0 %v1782_v17  ;;  %1657 = vmatprep.subr.bf16.mxu1 %v2568_v18  ;;  %v663_v17 = vld [vmem:[#allocation2 + $0x1e0] sm:$0xff] }
  0x90   : > { %1785 = vmatprep.subr.bf16.mxu0 %v1784_v23  ;;  %v947_v23 = vld [vmem:[%s2789_s6 + $0x1f0] sm:$0xff]  ;;  %v2616_v31 = vpack.c.bf16 %v665_v19, %v663_v17  ;;  %v825_v17 = vld [vmem:[#allocation4 + $0x20] sm:$0xff] }
  0x91   : > { %v1794_v35 = vpack.c.bf16 %v947_v23, %v945_v22  ;;  %v827_v19 = vld [vmem:[#allocation4 + $0x30] sm:$0xff]  ;;  %v834_v23 = vld [vmem:[#allocation4 + $0x68] sm:$0xff] }
  0x92   : > { %1659 = vmatpush1.bf16.msra.mxu1 %v2583_v36  ;;  %v1802_v24 = vpack.c.bf16 %v827_v19, %v825_v17  ;;  %v831_v22 = vld [vmem:[#allocation4 + $0x50] sm:$0xff]  ;;  %v852_v17 = vld [vmem:[#allocation4 + $0xf8] sm:$0xff] }
  0x93   : > { %1787 = vmatpush1.bf16.msra.mxu0 %v1786_v37  ;;  %1661 = vmatprep.subr.bf16.mxu1 %v2586_v38  ;;  %v1796_v37 = vpack.c.bf16 %v824_v30, %v822_v28  ;;  %v836_v28 = vld [vmem:[#allocation4 + $0x78] sm:$0xff]  ;;  %v833_v30 = vld [vmem:[#allocation4 + $0x60] sm:$0xff] }
  0x94   : > { %1789 = vmatprep.subr.bf16.mxu0 %v1788_v59  ;;  %v828_v59 = vld [vmem:[#allocation4 + $0x38] sm:$0xff] }
  0x96   : > { %1663 = vmatpush1.bf16.msra.mxu1 %v2601_v4 }
  0x97   : > { %1791 = vmatpush1.bf16.msra.mxu0 %v1790_v11  ;;  %1665 = vmatprep.subr.bf16.mxu1 %v2604_v13  ;;  %v1800_v11 = vpack.c.bf16 %v828_v59, %v826_v56  ;;  %v842_v56 = vld [vmem:[#allocation4 + $0xa8] sm:$0xff]  ;;  %v844_v59 = vld [vmem:[#allocation4 + $0xb8] sm:$0xff] }
  0x98   : > { %1793 = vmatprep.subr.bf16.mxu0 %v1792_v20  ;;  %v2644_v20 = vsel %vm575_vm1, %v1562_v61, %v582_v60  ;;  %v841_v60 = vld [vmem:[#allocation4 + $0xa0] sm:$0xff]  ;;  %v846_v61 = vld [vmem:[#allocation4 + $0xc8] sm:$0xff] }
  0x9a   : > { %1667 = vmatpush1.bf16.msra.mxu1 %v2616_v31 }
  0x9b   : > { %1795 = vmatpush1.bf16.msra.mxu0 %v1794_v35  ;;  %1669 = vmatprep.subr.bf16.mxu1 %v2285_v3  ;;  %v2649_v3 = vsel %vm575_vm1, %v1563_v2, %v595_v1  ;;  %v838_v35 = vld [vmem:[#allocation4 + $0x88] sm:$0xff]  ;;  %v845_v2 = vld [vmem:[#allocation4 + $0xc0] sm:$0xff] }
  0x9c   : > { %1797 = vmatprep.subr.bf16.mxu0 %v1796_v37  ;;  %v840_v37 = vld [vmem:[#allocation4 + $0x98] sm:$0xff] }
  0x9d   : > { %732 = vmatmul.mubr.f32.vlgmr.msra.gmra.mrb[0].mxu1 %v2515_v44  ;;  %v1812_v40 = vpack.c.bf16 %v840_v37, %v838_v35  ;;  %v861_v35 = vld [vmem:[#allocation4 + $0x140] sm:$0xff]  ;;  %v866_v37 = vld [vmem:[#allocation4 + $0x168] sm:$0xff] }
  0x9e   : > { %1671 = vmatpush1.bf16.msra.mxu1 %v2290_v8  ;;  %1014 = vmatmul.mubr.f32.vlgmr.msra.gmra.mrb[0].mxu0 %v2521_v47  ;;  %v1806_v8 = vpack.c.bf16 %v831_v22, %v829_v54  ;;  %v853_v54 = vld [vmem:[#allocation4 + $0x100] sm:$0xff]  ;;  %v858_v22 = vld [vmem:[#allocation4 + $0x128] sm:$0xff] }
  0x9f   : > { %1799 = vmatpush1.bf16.msra.mxu0 %v1798_v63  ;;  %1673 = vmatprep.subr.bf16.mxu1 %v2306_v16  ;;  %v1808_v16 = vpack.c.bf16 %v836_v28, %v834_v23  ;;  %v848_v63 = vld [vmem:[#allocation4 + $0xd8] sm:$0xff] }
  0xa0   : > { %1801 = vmatprep.subr.bf16.mxu0 %v1800_v11  ;;  %737 = vmatprep.mubr.f32.mxu1 %v2644_v20  ;;  %v1820_v1 = vpack.c.bf16 %v848_v63, %v846_v61  ;;  %v850_v11 = vld [vmem:[#allocation4 + $0xe8] sm:$0xff]  ;;  %v860_v23 = vld [vmem:[#allocation4 + $0x138] sm:$0xff]  ;;  %v873_v61 = vld [vmem:[#allocation4 + $0x1a0] sm:$0xff] }
  0xa1   : > { %1019 = vmatprep.mubr.f32.mxu0 %v2649_v3  ;;  %738 = vmatmul.mubr.f32.gmra.mrb[2].mxu1 %v2517_v45  ;;  %v1824_v19 = vpack.c.bf16 %v852_v17, %v850_v11  ;;  %v1832_v28 = vpack.c.bf16 %v860_v23, %v858_v22  ;;  %v878_v63 = vld [vmem:[#allocation4 + $0x1c8] sm:$0xff]  ;;  %v884_v11 = vld [vmem:[#allocation4 + $0x1f8] sm:$0xff]  ;;  %v1206_v23 = vld [vmem:[#allocation6 + $0x30] sm:$0xff] }
  0xa2   : > { %1675 = vmatpush1.bf16.msra.mxu1 %v2311_v21  ;;  %1020 = vmatmul.mubr.f32.gmra.mrb[2].mxu0 %v2523_v48  ;;  %v1810_v21 = vpack.c.bf16 %v835_v32, %v833_v30  ;;  %v864_v30 = vld [vmem:[#allocation4 + $0x158] sm:$0xff] }
  0xa3   : > { %1803 = vmatpush1.bf16.msra.mxu0 %v1802_v24  ;;  %1677 = vmatprep.subr.bf16.mxu1 %v2317_v26  ;;  %v837_v26 = vld [vmem:[#allocation4 + $0x80] sm:$0xff]  ;;  %v856_v24 = vld [vmem:[#allocation4 + $0x118] sm:$0xff] }
  0xa4   : > { %1805 = vmatprep.subr.bf16.mxu0 %v1804_v53  ;;  %808 = vmatprep.mubr.f32.mxu1 %v2554_v9  ;;  %v1814_v9 = vpack.c.bf16 %v839_v42, %v837_v26  ;;  %v1828_v53 = vpack.c.bf16 %v856_v24, %v854_v51  ;;  %v865_v26 = vld [vmem:[#allocation4 + $0x160] sm:$0xff]  ;;  %v870_v42 = vld [vmem:[#allocation4 + $0x188] sm:$0xff] }
  0xa5   : > { %1090 = vmatprep.mubr.f32.mxu0 %v2546_v5  ;;  %v1816_v5 = vpack.c.bf16 %v844_v59, %v842_v56  ;;  %v872_v56 = vld [vmem:[#allocation4 + $0x198] sm:$0xff]  ;;  %v1204_v24 = vld [vmem:[#allocation6 + $0x20] sm:$0xff] }
  0xa6   : > { %1679 = vmatpush1.bf16.msra.mxu1 %v2332_v34  ;;  %v843_v34 = vld [vmem:[#allocation4 + $0xb0] sm:$0xff]  ;;  %v1844_v59 = vpack.c.bf16 %v872_v56, %v870_v42  ;;  %v1212_v56 = vld [vmem:[#allocation6 + $0x60] sm:$0xff] }
  0xa7   : > { %1807 = vmatpush1.bf16.msra.mxu0 %v1806_v8  ;;  %1681 = vmatprep.subr.bf16.mxu1 %v2338_v39  ;;  %v1818_v39 = vpack.c.bf16 %v843_v34, %v841_v60  ;;  %v857_v8 = vld [vmem:[#allocation4 + $0x120] sm:$0xff]  ;;  %v876_v60 = vld [vmem:[#allocation4 + $0x1b8] sm:$0xff] }
  0xa8   : > { %1809 = vmatprep.subr.bf16.mxu0 %v1808_v16  ;;  %v862_v16 = vld [vmem:[#allocation4 + $0x148] sm:$0xff] }
  0xa9   : > { %v1836_v32 = vpack.c.bf16 %v864_v30, %v862_v16  ;;  %v1208_v30 = vld [vmem:[#allocation6 + $0x40] sm:$0xff] }
  0xaa   : > { %1683 = vmatpush1.bf16.msra.mxu1 %v2356_v50  ;;  %v847_v50 = vld [vmem:[#allocation4 + $0xd0] sm:$0xff] }
  0xab   : > { %1811 = vmatpush1.bf16.msra.mxu0 %v1810_v21  ;;  %1685 = vmatprep.subr.bf16.mxu1 %v2359_v52  ;;  %v1822_v52 = vpack.c.bf16 %v847_v50, %v845_v2  ;;  %v868_v21 = vld [vmem:[#allocation4 + $0x178] sm:$0xff]  ;;  %v877_v2 = vld [vmem:[#allocation4 + $0x1c0] sm:$0xff]  ;;  %v882_v50 = vld [vmem:[#allocation4 + $0x1e8] sm:$0xff] }
  0xac   : > { %1813 = vmatprep.subr.bf16.mxu0 %v1812_v40  ;;  %v1840_v40 = vpack.c.bf16 %v868_v21, %v866_v37  ;;  %v1856_v17 = vpack.c.bf16 %v884_v11, %v882_v50  ;;  %v1210_v21 = vld [vmem:[#allocation6 + $0x50] sm:$0xff] }
  0xae   : > { %1687 = vmatpush1.bf16.msra.mxu1 %v2374_v62  ;;  %v851_v62 = vld [vmem:[#allocation4 + $0xf0] sm:$0xff] }
  0xaf   : > { %1815 = vmatpush1.bf16.msra.mxu0 %v1814_v9  ;;  %1689 = vmatprep.subr.bf16.mxu1 %v2377_v0  ;;  %v1826_v0 = vpack.c.bf16 %v851_v62, %v849_v46  ;;  %v869_v9 = vld [vmem:[#allocation4 + $0x180] sm:$0xff]  ;;  %v1221_v62 = vld [vmem:[#allocation6 + $0xa8] sm:$0xff] }
  0xb0   : > { %1817 = vmatprep.subr.bf16.mxu0 %v1816_v5  ;;  %v874_v5 = vld [vmem:[#allocation4 + $0x1a8] sm:$0xff] }
  0xb1   : > { %v1848_v34 = vpack.c.bf16 %v876_v60, %v874_v5  ;;  %v1214_v60 = vld [vmem:[#allocation6 + $0x70] sm:$0xff] }
  0xb2   : > { %1691 = vmatpush1.bf16.msra.mxu1 %v2392_v12  ;;  %v855_v12 = vld [vmem:[#allocation4 + $0x110] sm:$0xff] }
  0xb3   : > { %1819 = vmatpush1.bf16.msra.mxu0 %v1818_v39  ;;  %1693 = vmatprep.subr.bf16.mxu1 %v2395_v14  ;;  %v1830_v14 = vpack.c.bf16 %v855_v12, %v853_v54  ;;  %v880_v39 = vld [vmem:[#allocation4 + $0x1d8] sm:$0xff]  ;;  %v1222_v54 = vld [vmem:[#allocation6 + $0xb0] sm:$0xff] }
  0xb4   : > { %1821 = vmatprep.subr.bf16.mxu0 %v1820_v1  ;;  %v1852_v1 = vpack.c.bf16 %v880_v39, %v878_v63  ;;  %v1223_v12 = vld [vmem:[#allocation6 + $0xb8] sm:$0xff] }
  0xb5   : > { %v1872_v22 = vpack.c.bf16 %v1223_v12, %v1222_v54 }
  0xb6   : > { %1695 = vmatpush1.bf16.msra.mxu1 %v2410_v27  ;;  %v859_v27 = vld [vmem:[#allocation4 + $0x130] sm:$0xff] }
  0xb7   : > { %1823 = vmatpush1.bf16.msra.mxu0 %v1822_v52  ;;  %1697 = vmatprep.subr.bf16.mxu1 %v2413_v29  ;;  %v1834_v29 = vpack.c.bf16 %v859_v27, %v857_v8  ;;  %v881_v52 = vld [vmem:[#allocation4 + $0x1e0] sm:$0xff]  ;;  %v1225_v27 = vld [vmem:[#allocation6 + $0xc8] sm:$0xff] }
  0xb8   : > { %1825 = vmatprep.subr.bf16.mxu0 %v1824_v19  ;;  %v1201_v19 = vld [vmem:[#allocation6 + $0x8] sm:$0xff]  ;;  %v1224_v8 = vld [vmem:[#allocation6 + $0xc0] sm:$0xff] }
  0xb9   : > { %v1876_v16 = vpack.c.bf16 %v1225_v27, %v1224_v8  ;;  %v2732_v27 = vand.u32 127, %v569_v6 }
  0xba   : > { %1699 = vmatpush1.bf16.msra.mxu1 %v2429_v41  ;;  %v863_v41 = vld [vmem:[#allocation4 + $0x150] sm:$0xff] }
  0xbb   : > { %1827 = vmatpush1.bf16.msra.mxu0 %v1826_v0  ;;  %1701 = vmatprep.subr.bf16.mxu1 %v2432_v43  ;;  %v1838_v43 = vpack.c.bf16 %v863_v41, %v861_v35  ;;  %v1205_v0 = vld [vmem:[#allocation6 + $0x28] sm:$0xff]  ;;  %v1226_v35 = vld [vmem:[#allocation6 + $0xd0] sm:$0xff]  ;;  %v1227_v41 = vld [vmem:[#allocation6 + $0xd8] sm:$0xff]  ;;  %vm1185_vm4 = vcmp.eq.s32.totalorder %v2732_v27, 0  ;;  %vm1307_vm9 = vcmp.lt.s32.totalorder %v2732_v27, 64 }
  0xbc   : > { %1829 = vmatprep.subr.bf16.mxu0 %v1828_v53  ;;  %v1870_v53 = vpack.c.bf16 %v1205_v0, %v1204_v24  ;;  %v1880_v37 = vpack.c.bf16 %v1227_v41, %v1226_v35 }
  0xbe   : > { %1703 = vmatpush1.bf16.msra.mxu1 %v2452_v55  ;;  %v867_v55 = vld [vmem:[#allocation4 + $0x170] sm:$0xff] }
  0xbf   : > { %1831 = vmatpush1.bf16.msra.mxu0 %v1830_v14  ;;  %1705 = vmatprep.subr.bf16.mxu1 %v2455_v57  ;;  %v1842_v57 = vpack.c.bf16 %v867_v55, %v865_v26  ;;  %v1207_v14 = vld [vmem:[#allocation6 + $0x38] sm:$0xff]  ;;  %v1228_v26 = vld [vmem:[#allocation6 + $0xe0] sm:$0xff]  ;;  %v1229_v55 = vld [vmem:[#allocation6 + $0xe8] sm:$0xff] }
  0xc0   : > { %1833 = vmatprep.subr.bf16.mxu0 %v1832_v28  ;;  %v1874_v28 = vpack.c.bf16 %v1207_v14, %v1206_v23  ;;  %v1884_v42 = vpack.c.bf16 %v1229_v55, %v1228_v26 }
  0xc2   : > { %1707 = vmatpush1.bf16.msra.mxu1 %v2471_v7  ;;  %v871_v7 = vld [vmem:[#allocation4 + $0x190] sm:$0xff] }
  0xc3   : > { %1835 = vmatpush1.bf16.msra.mxu0 %v1834_v29  ;;  %1709 = vmatprep.subr.bf16.mxu1 %v2474_v10  ;;  %v1846_v10 = vpack.c.bf16 %v871_v7, %v869_v9  ;;  %v1209_v29 = vld [vmem:[#allocation6 + $0x48] sm:$0xff]  ;;  %v1230_v9 = vld [vmem:[#allocation6 + $0xf0] sm:$0xff]  ;;  %v1231_v7 = vld [vmem:[#allocation6 + $0xf8] sm:$0xff] }
  0xc4   : > { %1837 = vmatprep.subr.bf16.mxu0 %v1836_v32  ;;  %v1878_v32 = vpack.c.bf16 %v1209_v29, %v1208_v30  ;;  %v1888_v5 = vpack.c.bf16 %v1231_v7, %v1230_v9 }
  0xc6   : > { %1711 = vmatpush1.bf16.msra.mxu1 %v2495_v25  ;;  %v875_v25 = vld [vmem:[#allocation4 + $0x1b0] sm:$0xff] }
  0xc7   : > { %1839 = vmatpush1.bf16.msra.mxu0 %v1838_v43  ;;  %1713 = vmatprep.subr.bf16.mxu1 %v2504_v33  ;;  %v1850_v33 = vpack.c.bf16 %v875_v25, %v873_v61  ;;  %v1211_v43 = vld [vmem:[#allocation6 + $0x58] sm:$0xff] }
  0xc8   : > { %1841 = vmatprep.subr.bf16.mxu0 %v1840_v40  ;;  %v1882_v40 = vpack.c.bf16 %v1211_v43, %v1210_v21  ;;  %v2111_v21 = vmov -1.0  }
  0xca   : > { %1715 = vmatpush1.bf16.msra.mxu1 %v2526_v49  ;;  %v879_v49 = vld [vmem:[#allocation4 + $0x1d0] sm:$0xff] }
  0xcb   : > { %1843 = vmatpush1.bf16.msra.mxu0 %v1842_v57  ;;  %1717 = vmatprep.subr.bf16.mxu1 %v2532_v58  ;;  %v1854_v58 = vpack.c.bf16 %v879_v49, %v877_v2  ;;  %v1213_v57 = vld [vmem:[#allocation6 + $0x68] sm:$0xff] }
  0xcc   : > { %1845 = vmatprep.subr.bf16.mxu0 %v1844_v59  ;;  %v1886_v59 = vpack.c.bf16 %v1213_v57, %v1212_v56 }
  0xce   : > { %1719 = vmatpush1.bf16.msra.mxu1 %v2565_v15  ;;  %v883_v15 = vld [vmem:[#allocation4 + $0x1f0] sm:$0xff] }
  0xcf   : > { %1847 = vmatpush1.bf16.msra.mxu0 %v1846_v10  ;;  %1721 = vmatprep.subr.bf16.mxu1 %v2568_v18  ;;  %v1858_v18 = vpack.c.bf16 %v883_v15, %v881_v52  ;;  %v1215_v10 = vld [vmem:[#allocation6 + $0x78] sm:$0xff] }
  0xd0   : > { %1849 = vmatprep.subr.bf16.mxu0 %v1848_v34  ;;  %v1890_v34 = vpack.c.bf16 %v1215_v10, %v1214_v60 }
  0xd2   : > { %1723 = vmatpush1.bf16.msra.mxu1 %v2583_v36  ;;  %v1216_v36 = vld [vmem:[#allocation6 + $0x80] sm:$0xff] }
  0xd3   : > { %1851 = vmatpush1.bf16.msra.mxu0 %v1850_v33  ;;  %1725 = vmatprep.subr.bf16.mxu1 %v2586_v38  ;;  %v1217_v38 = vld [vmem:[#allocation6 + $0x88] sm:$0xff] }
  0xd4   : > { %1853 = vmatprep.subr.bf16.mxu0 %v1852_v1 }
  0xd6   : > { %1727 = vmatpush1.bf16.msra.mxu1 %v2601_v4  ;;  %v1200_v4 = vld [vmem:[#allocation6] sm:$0xff] }
  0xd7   : > { %1855 = vmatpush1.bf16.msra.mxu0 %v1854_v58  ;;  %1729 = vmatprep.subr.bf16.mxu1 %v2604_v13  ;;  %v1860_v13 = vpack.c.bf16 %v1217_v38, %v1216_v36  ;;  %v1862_v46 = vpack.c.bf16 %v1201_v19, %v1200_v4 }
  0xd8   : > { %1857 = vmatprep.subr.bf16.mxu0 %v1856_v17 }
  0xda   : > { %1731 = vmatpush1.bf16.msra.mxu1 %v2616_v31  ;;  %v1219_v31 = vld [vmem:[#allocation6 + $0x98] sm:$0xff] }
  0xdb   : > { %1859 = vmatpush1.bf16.msra.mxu0 %v1858_v18  ;;  %1892 = vmatprep.subr.bf16.mxu1 %v1860_v13 }
  0xdc   : > { %1861 = vmatprep.subr.bf16.mxu0 %v1860_v13 }
  0xdd   : > { %809 = vmatmul.mubr.f32.vlgmr.msra.gmra.mrb[4].mxu1 %v2521_v47  ;;  %v1218_v47 = vld [vmem:[#allocation6 + $0x90] sm:$0xff] }
  0xde   : > { %1091 = vmatmul.mubr.f32.vlgmr.msra.gmra.mrb[0].mxu0 %v2515_v44  ;;  %814 = vmatprep.mubr.f32.mxu1 %v2649_v3  ;;  %v1864_v44 = vpack.c.bf16 %v1219_v31, %v1218_v47  ;;  %v1203_v3 = vld [vmem:[#allocation6 + $0x18] sm:$0xff] }
  0xdf   : > { %1096 = vmatprep.mubr.f32.mxu0 %v2644_v20  ;;  %1863 = vmatpush3.bf16.msra.mxu0 %v1862_v46  ;;  %v1202_v20 = vld [vmem:[#allocation6 + $0x10] sm:$0xff] }
  0xe0   : > { %1900 = vmatpush3.bf16.msra.mxu1 %v1862_v46  ;;  %1865 = vmatprep.subr.bf16.mxu0 %v1864_v44 }
  0xe1   : > { %815 = vmatmul.mubr.f32.gmra.mrb[6].mxu1 %v2523_v48  ;;  %1893 = vmatprep.subr.bf16.mxu1 %v1864_v44  ;;  %v1866_v48 = vpack.c.bf16 %v1203_v3, %v1202_v20 }
  0xe2   : > { %1097 = vmatmul.mubr.f32.gmra.mrb[2].mxu0 %v2517_v45  ;;  %v1220_v45 = vld [vmem:[#allocation6 + $0xa0] sm:$0xff] }
  0xe3   : > { %1867 = vmatpush3.bf16.msra.mxu0 %v1866_v48  ;;  %v1868_v51 = vpack.c.bf16 %v1221_v62, %v1220_v45 }
  0xe4   : > { %1901 = vmatpush3.bf16.msra.mxu1 %v1866_v48 }
  0xe5   : > { %1869 = vmatprep.subr.bf16.mxu0 %v1868_v51  ;;  %1894 = vmatprep.subr.bf16.mxu1 %v1868_v51 }
  0xe7   : > { %1871 = vmatpush3.bf16.msra.mxu0 %v1870_v53 }
  0xe8   : > { %1902 = vmatpush3.bf16.msra.mxu1 %v1870_v53  ;;  %1873 = vmatprep.subr.bf16.mxu0 %v1872_v22 }
  0xe9   : > { %1895 = vmatprep.subr.bf16.mxu1 %v1872_v22 }
  0xeb   : > { %1875 = vmatpush3.bf16.msra.mxu0 %v1874_v28 }
  0xec   : > { %1903 = vmatpush3.bf16.msra.mxu1 %v1874_v28  ;;  %1877 = vmatprep.subr.bf16.mxu0 %v1876_v16 }
  0xed   : > { %1896 = vmatprep.subr.bf16.mxu1 %v1876_v16 }
  0xef   : > { %1879 = vmatpush3.bf16.msra.mxu0 %v1878_v32 }
  0xf0   : > { %1904 = vmatpush3.bf16.msra.mxu1 %v1878_v32  ;;  %1881 = vmatprep.subr.bf16.mxu0 %v1880_v37 }
  0xf1   : > { %1897 = vmatprep.subr.bf16.mxu1 %v1880_v37 }
  0xf3   : > { %1883 = vmatpush3.bf16.msra.mxu0 %v1882_v40 }
  0xf4   : > { %1905 = vmatpush3.bf16.msra.mxu1 %v1882_v40  ;;  %1885 = vmatprep.subr.bf16.mxu0 %v1884_v42 }
  0xf5   : > { %1898 = vmatprep.subr.bf16.mxu1 %v1884_v42 }
  0xf7   : > { %1887 = vmatpush3.bf16.msra.mxu0 %v1886_v59 }
  0xf8   : > { %1906 = vmatpush3.bf16.msra.mxu1 %v1886_v59  ;;  %1889 = vmatprep.subr.bf16.mxu0 %v1888_v5 }
  0xf9   : > { %1899 = vmatprep.subr.bf16.mxu1 %v1888_v5 }
  0xfb   : > { %1891 = vmatpush3.bf16.msra.mxu0 %v1890_v34 }
  0xfc   : > { %1907 = vmatpush3.bf16.msra.mxu1 %v1890_v34 }
 0x170   : > { %v733_v61 = vpop.f32.mrb[0].mxu1 }
 0x171   : > { %v735_v25 = vpop.f32.mrb[1].mxu1 }
 0x174   : > { %v739_v63 = vpop.f32.mrb[2].mxu1 }
 0x175   : > { %v741_v39 = vpop.f32.mrb[3].mxu1 }
 0x1b0   : > { %v810_v33 = vpop.f32.mrb[4].mxu1 }
 0x1b1   : > { %v1159_v1 = vmul.f32 %v810_v33, %v733_v61  ;;  %v1165_v2 = vmul.f32 %v810_v33, %v735_v25  ;;  %v2693_v49 = vpop.f32.mrb[0].mxu0  ;;  %v812_v50 = vpop.f32.mrb[5].mxu1 }
 0x1b2   : > { %v1103_v11 = vmul.f32 %v2693_v49, %v2693_v49  ;;  %1121 = vrot.lane.b32.xlu1 %v2693_v49, %s2110_s16  ;;  %v1161_v58 = vmul.f32 %v812_v50, %v735_v25  ;;  %v1167_v17 = vmul.f32 %v812_v50, %v733_v61  ;;  %v2699_v52 = vpop.f32.mrb[1].mxu0 }
 0x1b3   : > { %v1105_v15 = vmul.f32 %v2699_v52, %v2699_v52  ;;  %vm1186_vm2 = vcmp.ge.f32.partialorder %v1159_v1, 0.0 }
 0x1b4   : > { %v1163_v18 = vadd.f32 %v1161_v58, %v1159_v1  ;;  %v1169_v36 = vsub.f32 %v1165_v2, %v1167_v17  ;;  %v816_v38 = vpop.f32.mrb[6].mxu1  ;;  %vm1194_vm3 = vcmp.ge.f32.partialorder %v1161_v58, 0.0  ;;  %v1188_v6 = vsel %vm1186_vm2, 1.0, %v2111_v21 }
 0x1b5   : > { %v2703_v4 = vmul.f32 %v816_v38, %v739_v63  ;;  %v1166_v13 = vmul.f32 %v816_v38, %v741_v39  ;;  %v2705_v19 = vpop.f32.mrb[2].mxu0  ;;  %v818_v46 = vpop.f32.mrb[7].mxu1  ;;  %v2707_v47 = vadd.f32 %v1105_v15, %v1103_v11  ;;  %v1196_v40 = vsel %vm1194_vm3, 1.0, %v2111_v21 }
 0x1b6   : > { %v1171_v31 = vmul.f32 %v1163_v18, %v1163_v18  ;;  %v1173_v44 = vmul.f32 %v1169_v36, %v1169_v36  ;;  %v1104_v20 = vmul.f32 %v2705_v19, %v2705_v19  ;;  %1123 = vrot.lane.b32.xlu1 %v2705_v19, %s2110_s16  ;;  %v1162_v3 = vmul.f32 %v818_v46, %v741_v39  ;;  %v2713_v48 = vpop.f32.mrb[3].mxu0 }
 0x1b7   : > { %v1168_v45 = vmul.f32 %v818_v46, %v739_v63  ;;  %v1106_v62 = vmul.f32 %v2713_v48, %v2713_v48  ;;  %1117 = vrot.lane.b32.xlu0 %v2707_v47, %s2110_s16  ;;  %v1109_v51 = vmax.f32 %v2707_v47, 1e-20  ;;  %vm1187_vm5 = vcmp.ge.f32.partialorder %v2703_v4, 0.0 }
 0x1b8   : > { %v1175_v24 = vadd.f32 %v1173_v44, %v1171_v31  ;;  %v1164_v0 = vadd.f32 %v1162_v3, %v2703_v4  ;;  %vm1195_vm6 = vcmp.ge.f32.partialorder %v1162_v3, 0.0  ;;  %v1189_v7 = vsel %vm1187_vm5, 1.0, %v2111_v21 }
 0x1b9   : > { %v1170_v53 = vsub.f32 %v1166_v13, %v1168_v45  ;;  %1975 = vlog2.f32 %v1109_v51  ;;  %v2721_v54 = vadd.f32 %v1106_v62, %v1104_v20  ;;  %v1197_v5 = vsel %vm1195_vm6, 1.0, %v2111_v21 }
 0x1ba   : > { %v1177_v12 = vadd.f32 1e-30, %v1175_v24  ;;  %v1172_v22 = vmul.f32 %v1164_v0, %v1164_v0  ;;  %1127 = vrot.lane.b32.xlu1 %v2713_v48, %s2110_s16 }
 0x1bb   : > { %v1174_v23 = vmul.f32 %v1170_v53, %v1170_v53  ;;  %1119 = vrot.lane.b32.xlu0 %v2721_v54, %s2110_s16  ;;  %v1110_v14 = vmax.f32 %v2721_v54, 1e-20 }
 0x1bc   : > { %1977 = vrsqrt.f32 %v1177_v12 }
 0x1bd   : > { %v1176_v28 = vadd.f32 %v1174_v23, %v1172_v22  ;;  %1979 = vlog2.f32 %v1110_v14 }
 0x1bf   : > { %v1178_v8 = vadd.f32 1e-30, %v1176_v28  ;;  %1125 = vrot.lane.b32.xlu0 %v2699_v52, %s2110_s16 }
 0x1c1   : > { %1981 = vrsqrt.f32 %v1178_v8 }
 0x1c3   : > { %v1976_v16 = vpop.eup %1975 }
 0x1c4   : > { %v1112_v30 = vmul.f32 0.6931472, %v1976_v16 }
 0x1c6   : > { %v1978_v29 = vpop.eup %1977  ;;  %v1115_v32 = vmul.f32 2.1714723, %v1112_v30 }
 0x1c7   : > { %v1980_v35 = vpop.eup %1979  ;;  %v1181_v41 = vmul.f32 %v1978_v29, %v1163_v18  ;;  %v1183_v37 = vmul.f32 %v1978_v29, %v1169_v36 }
 0x1c8   : > { %v1114_v43 = vmul.f32 0.6931472, %v1980_v35  ;;  %1308 = vst [vmem:[%s2737_s14] sm:$0xff] %v1115_v32 }
 0x1c9   : > { %v1198_v26 = vsel %vm1185_vm4, %v1196_v40, %v1183_v37  ;;  %v1192_v55 = vsel %vm1185_vm4, %v1188_v6, %v1181_v41 }
 0x1ca   : > { %v1116_v42 = vmul.f32 2.1714723, %v1114_v43  ;;  %1296 = vmatprep.mubr.f32.mxu0 %v1198_v26 }
 0x1cb   : > { %v1982_v56 = vpop.eup %1981  ;;  %1297 = vmatmul.mubr.f32.vlgmr.msra.gmra.mrb[4].mxu0 %v1192_v55 }
 0x1cc   : > { %v1182_v57 = vmul.f32 %v1982_v56, %v1164_v0  ;;  %v1184_v59 = vmul.f32 %v1982_v56, %v1170_v53  ;;  %v1324_v9 = vmax.f32 %v1115_v32, %v1116_v42  ;;  %1309 = vst [vmem:[%s2737_s14 + $0x18] sm:$0xff] %v1116_v42 }
 0x1ce   : > { %v1325_v60 = vrot.slane %v1324_v9, 4  ;;  %v1199_v10 = vsel %vm1185_vm4, %v1197_v5, %v1184_v59  ;;  %v1193_v34 = vsel %vm1185_vm4, %v1189_v7, %v1182_v57 }
 0x1cf   : > { %1301 = vmatprep.mubr.f32.mxu1 %v1199_v10 }
 0x1d0   : > { %v1326_v61 = vmax.f32 %v1324_v9, %v1325_v60  ;;  %1302 = vmatmul.mubr.f32.vlgmr.msra.gmra.mrb[8].mxu1 %v1193_v34 }
 0x1d2   : > { %v1327_v25 = vrot.slane %v1326_v61, 2 }
 0x1d4   : > { %v1328_v63 = vmax.f32 %v1326_v61, %v1327_v25 }
 0x1d6   : > { %v1329_v39 = vrot.slane %v1328_v63, 1 }
 0x1d8   : > { %v1330_v33 = vmax.f32 %v1328_v63, %v1329_v39 }
 0x1da   : > { %1331 = vst [vmem:[%s568_s23] sm:$0xff] %v1330_v33 }
 0x224   : > { %v1122_v1 = vpop.permute.xlu1 %1121 }
 0x225   : > { %v1129_v2 = vmul.f32 %v1122_v1, %v2693_v49  ;;  %v1135_v45 = vmul.f32 %v1122_v1, %v2699_v52 }
 0x228   : > { %v1124_v50 = vpop.permute.xlu1 %1123 }
 0x229   : > { %v1130_v11 = vmul.f32 %v1124_v50, %v2705_v19  ;;  %v1118_v58 = vpop.permute.xlu0 %1117  ;;  %v1136_v36 = vmul.f32 %v1124_v50, %v2713_v48 }
 0x22a   : > { %v1141_v17 = vmul.f32 %v1118_v58, %v2707_v47 }
 0x22c   : > { %v1143_v15 = vadd.f32 1e-30, %v1141_v17  ;;  %v1128_v18 = vpop.permute.xlu1 %1127  ;;  %vm1149_vm7 = vcmp.gt.f32.partialorder %v1141_v17, 0.0 }
 0x22d   : > { %v1132_v38 = vmul.f32 %v1128_v18, %v2713_v48  ;;  %v1138_v4 = vmul.f32 %v1128_v18, %v2705_v19  ;;  %v1120_v13 = vpop.permute.xlu0 %1119 }
 0x22e   : > { %1983 = vrsqrt.f32 %v1143_v15  ;;  %v1142_v46 = vmul.f32 %v1120_v13, %v2721_v54 }
 0x22f   : > { %v1134_v31 = vadd.f32 %v1132_v38, %v1130_v11  ;;  %v1140_v44 = vsub.f32 %v1136_v36, %v1138_v4 }
 0x230   : > { %v1144_v20 = vadd.f32 1e-30, %v1142_v46  ;;  %vm1150_vm8 = vcmp.gt.f32.partialorder %v1142_v46, 0.0 }
 0x231   : > { %v1126_v3 = vpop.permute.xlu0 %1125 }
 0x232   : > { %1985 = vrsqrt.f32 %v1144_v20  ;;  %v1131_v62 = vmul.f32 %v1126_v3, %v2699_v52  ;;  %v1137_v51 = vmul.f32 %v1126_v3, %v2693_v49 }
 0x234   : > { %v1133_v24 = vadd.f32 %v1131_v62, %v1129_v2  ;;  %v1139_v0 = vsub.f32 %v1135_v45, %v1137_v51 }
 0x238   : > { %v1984_v48 = vpop.eup %1983 }
 0x239   : > { %v1151_v53 = vmul.f32 %v1984_v48, %v1133_v24  ;;  %v1155_v19 = vmul.f32 %v1984_v48, %v1139_v0  ;;  %v1147_v21 = vmul.f32 %v1984_v48, %v2707_v47 }
 0x23b   : > { %v1157_v12 = vsel %vm1149_vm7, %v1155_v19, 0.0  ;;  %v1153_v22 = vsel %vm1149_vm7, %v1151_v53, 1.0 }
 0x23c   : > { %v1986_v23 = vpop.eup %1985  ;;  %1310 = vrot.lane.b32.xlu0 %v1157_v12, %s2110_s16 }
 0x23d   : > { %v1152_v14 = vmul.f32 %v1986_v23, %v1134_v31  ;;  %v1156_v28 = vmul.f32 %v1986_v23, %v1140_v44  ;;  %v1148_v40 = vmul.f32 %v1986_v23, %v2721_v54 }
 0x23f   : > { %v1154_v8 = vsel %vm1150_vm8, %v1152_v14, 1.0  ;;  %v1158_v52 = vsel %vm1150_vm8, %v1156_v28, 0.0 }
 0x240   : > { %1312 = vrot.lane.b32.xlu1 %v1158_v52, %s2110_s16 }
 0x29e   : > { %v1598_v49 = vpop.f32.mrb[4].mxu0 }
 0x29f   : > { %v1599_v16 = vpop.f32.mrb[5].mxu0 }
 0x2a0   : > { %v1600_v30 = vadd.f32 %v1599_v16, %v1598_v49 }
 0x2a2   : > { %v1320_v29 = vsel %vm1307_vm9, %v1153_v22, %v1600_v30 }
 0x2a3   : > { %1322 = vst [vmem:[%s2737_s14 + $0x10] sm:$0xff] %v1320_v29  ;;  %v1601_v32 = vpop.f32.mrb[8].mxu1 }
 0x2a4   : > { %v1602_v35 = vpop.f32.mrb[9].mxu1 }
 0x2a5   : > { %v1603_v41 = vadd.f32 %v1602_v35, %v1601_v32 }
 0x2a7   : > { %v1321_v37 = vsel %vm1307_vm9, %v1154_v8, %v1603_v41 }
 0x2a8   : > { %1323 = vst [vmem:[%s2737_s14 + $0x28] sm:$0xff] %v1321_v37 }
 0x2ae   : > { %v1311_v6 = vpop.permute.xlu0 %1310 }
 0x2af   : > { %v1316_v43 = vsel %vm1307_vm9, %v1147_v21, %v1311_v6 }
 0x2b0   : > { %1318 = vst [vmem:[%s2737_s14 + $0x8] sm:$0xff] %v1316_v43 }
 0x2b2   : > { %v1313_v26 = vpop.permute.xlu1 %1312 }
 0x2b3   : > { %v1317_v55 = vsel %vm1307_vm9, %v1148_v40, %v1313_v26 }
 0x2b4   : > { %1319 = vst [vmem:[%s2737_s14 + $0x20] sm:$0xff] %v1317_v55 }
 0x2b5 PF: > { %s22_s11 = sadd.s32 1, %s2101_s11   ;;  %s2805_s30 = sld [smem:[#allocation9_spill]] }
 0x2b6   : > { %p19_p8 = scmp.ge.s32.totalorder %s22_s11, 4   ;;  %s2806_s10 = smov %s2808_s18 }
 0x2b8   :  { %21 = sbr.rel (!%p19_p8) target bundleno = 3 (0x3), region = 116 }
 0x2bf   :  { %1384 = vsyncpa [#allocation3], 1 }
 0x2c0   :  { %1386 = vsyncpa [#allocation3 + $0x1], 1 }
 0x2c1   :  { %1387 = vsyncpa [#allocation5], 1 }

</bundles_post_ra>
